<compile_context>
chip_gen: v7x
topology: tpu7x:2x2x1
jax: 0.10.0
libtpu: 0.0.40
codegen_flags: <defaults>
</compile_context>

<pallas_src>
import jax
import jax.numpy as jnp
from jax.experimental import pallas as pl
from jax.experimental.pallas import tpu as pltpu

IN = 784        # MNIST 28*28
HID = 400       # encoder / decoder hidden width
LAT = 60        # latent size
LAT_PAD = 64    # latent padded to a clean lane offset
HEAD = 2 * LAT_PAD      # fused mu||logvar head width (lane-dense: 128)
MAX_BLOCK_B = 256       # batch rows per grid step (v6e/v7x; use 128 on v5e)


def _vae_fwd_kernel(
    x_ref,                 # [bb, 784]  bf16
    w1_ref, b1_ref,        # encoder Linear(784,400):  [784,400] bf16, [1,400] f32
    wh_ref, bh_ref,        # fused mu||logvar head:    [400,128] bf16, [1,128] f32
    wd1_ref, bd1_ref,      # decoder Linear(60,400):   [64,400] bf16 (rows 60:64 = 0), [1,400] f32
    wd2_ref, bd2_ref,      # decoder Linear(400,784):  [400,784] bf16, [1,784] f32
    eps_ref,               # [bb, 64]  f32 uniform[0,1) noise (torch.rand_like semantics)
    recon_ref,             # [bb, 784] f32
    head_ref,              # [bb, 128] f32  (mu in [:, :64], logvar in [:, 64:])
):
    # encoder: Linear + ReLU  (bf16 operands, f32 MXU accumulation)
    h = jnp.dot(x_ref[...], w1_ref[...], preferred_element_type=jnp.float32)
    h = jnp.maximum(h + b1_ref[...], 0.0)

    # fused mu / logvar heads: single 128-wide (lane-dense) matmul
    head = jnp.dot(h.astype(jnp.bfloat16), wh_ref[...],
                   preferred_element_type=jnp.float32) + bh_ref[...]
    mu = head[:, :LAT_PAD]
    logvar = head[:, LAT_PAD:]

    # reparameterization: std * eps + mu  (eps ~ Uniform[0,1), matching torch.rand_like)
    std = jnp.exp(0.5 * logvar)              # f32 transcendental on the EUP
    z = std * eps_ref[...] + mu              # padded latent cols hit zero rows of wd1 -> no effect

    # decoder: Linear -> Linear -> Sigmoid
    d = jnp.dot(z.astype(jnp.bfloat16), wd1_ref[...],
                preferred_element_type=jnp.float32) + bd1_ref[...]
    y = jnp.dot(d.astype(jnp.bfloat16), wd2_ref[...],
                preferred_element_type=jnp.float32) + bd2_ref[...]
    # sigmoid = 1 / (1 + exp(-y)): exp + approx reciprocal both live on the EUP slot
    recon = pl.reciprocal(1.0 + jnp.exp(-y), approx=True)

    recon_ref[...] = recon.astype(recon_ref.dtype)
    head_ref[...] = head.astype(head_ref.dtype)


def prepare_kernel_params(params):
    """One-time prep: cast weights to bf16, fuse + zero-pad the two latent heads."""
    bf, f32 = jnp.bfloat16, jnp.float32
    pad_cols = ((0, 0), (0, LAT_PAD - LAT))
    wh = jnp.concatenate(
        [jnp.pad(params["wmu"], pad_cols), jnp.pad(params["wlv"], pad_cols)], axis=1)
    bh = jnp.concatenate(
        [jnp.pad(params["bmu"], pad_cols), jnp.pad(params["blv"], pad_cols)], axis=1)
    wd1 = jnp.pad(params["wd1"], ((0, LAT_PAD - LAT), (0, 0)))   # zero rows for padded latent
    return dict(
        w1=params["w1"].astype(bf), b1=params["b1"].astype(f32),
        wh=wh.astype(bf), bh=bh.astype(f32),
        wd1=wd1.astype(bf), bd1=params["bd1"].astype(f32),
        wd2=params["wd2"].astype(bf), bd2=params["bd2"].astype(f32),
    )


@jax.jit
def vae_forward(x, kparams, eps):
    """x: [B,784] f32, kparams: prepare_kernel_params() output, eps: [B,60] f32.
    Returns (recon [B,784], mu [B,60], logvar [B,60])."""
    B = x.shape[0]
    bb = MAX_BLOCK_B if B >= MAX_BLOCK_B else B
    num_blocks = pl.cdiv(B, bb)
    Bp = num_blocks * bb

    x_in = jnp.pad(x.astype(jnp.bfloat16), ((0, Bp - B), (0, 0)))
    eps_in = jnp.pad(eps.astype(jnp.float32), ((0, Bp - B), (0, LAT_PAD - LAT)))

    def batch_spec(width):
        return pl.BlockSpec((bb, width), lambda i: (i, 0))

    def resident_spec(shape):             # weights: same block every step -> stays in VMEM
        return pl.BlockSpec(shape, lambda i: (0, 0))

    args = (x_in,
            kparams["w1"], kparams["b1"], kparams["wh"], kparams["bh"],
            kparams["wd1"], kparams["bd1"], kparams["wd2"], kparams["bd2"],
            eps_in)
    in_specs = ([batch_spec(IN)]
                + [resident_spec(a.shape) for a in args[1:-1]]
                + [batch_spec(LAT_PAD)])

    out_shape = (jax.ShapeDtypeStruct((Bp, IN), jnp.float32),
                 jax.ShapeDtypeStruct((Bp, HEAD), jnp.float32))
    out_specs = (batch_spec(IN), batch_spec(HEAD))

    recon, head = pl.pallas_call(
        _vae_fwd_kernel,
        grid=(num_blocks,),
        in_specs=in_specs,
        out_specs=out_specs,
        out_shape=out_shape,
        compiler_params=pltpu.CompilerParams(
            dimension_semantics=("parallel",),
            vmem_limit_bytes=32 << 20,
        ),
    )(*args)

    mu = head[:B, :LAT]
    logvar = head[:B, LAT_PAD:LAT_PAD + LAT]
    return recon[:B], mu, logvar


def init_params(key):
    """PyTorch-style init U(-1/sqrt(fan_in), 1/sqrt(fan_in)); weights stored [in,out], biases [1,out]."""
    def linear(key, fan_in, fan_out):
        kw, kb = jax.random.split(key)
        bound = 1.0 / jnp.sqrt(fan_in)
        w = jax.random.uniform(kw, (fan_in, fan_out), jnp.float32, -bound, bound)
        b = jax.random.uniform(kb, (1, fan_out), jnp.float32, -bound, bound)
        return w, b

    keys = jax.random.split(key, 5)
    w1, b1 = linear(keys[0], IN, HID)
    wmu, bmu = linear(keys[1], HID, LAT)
    wlv, blv = linear(keys[2], HID, LAT)
    wd1, bd1 = linear(keys[3], LAT, HID)
    wd2, bd2 = linear(keys[4], HID, IN)
    return dict(w1=w1, b1=b1, wmu=wmu, bmu=bmu, wlv=wlv, blv=blv,
                wd1=wd1, bd1=bd1, wd2=wd2, bd2=bd2)


def reference_forward_f32(x, params, eps):
    """Pure f32 JAX reference of the original PyTorch forward."""
    h = jnp.maximum(x @ params["w1"] + params["b1"], 0.0)
    mu = h @ params["wmu"] + params["bmu"]
    logvar = h @ params["wlv"] + params["blv"]
    z = jnp.exp(0.5 * logvar) * eps + mu
    d = z @ params["wd1"] + params["bd1"]
    y = d @ params["wd2"] + params["bd2"]
    return jax.nn.sigmoid(y), mu, logvar


def reference_forward_bf16(x, params, eps):
    """Reference with the same bf16-operand / f32-accumulation numerics as the kernel."""
    bf = jnp.bfloat16
    dot = lambda a, b: jnp.dot(a.astype(bf), b.astype(bf), preferred_element_type=jnp.float32)
    h = jnp.maximum(dot(x, params["w1"]) + params["b1"], 0.0)
    mu = dot(h, params["wmu"]) + params["bmu"]
    logvar = dot(h, params["wlv"]) + params["blv"]
    z = jnp.exp(0.5 * logvar) * eps + mu
    d = dot(z, params["wd1"]) + params["bd1"]
    y = dot(d, params["wd2"]) + params["bd2"]
    return jax.nn.sigmoid(y), mu, logvar


if __name__ == "__main__":
    key = jax.random.PRNGKey(0)
    k_params, k_x, k_eps = jax.random.split(key, 3)

    B = 8
    params = init_params(k_params)
    kparams = prepare_kernel_params(params)
    x = jax.random.uniform(k_x, (B, IN), jnp.float32)      # MNIST-like input in [0,1)
    eps = jax.random.uniform(k_eps, (B, LAT), jnp.float32)  # torch.rand_like semantics

    recon, mu, logvar = vae_forward(x, kparams, eps)
    jax.block_until_ready((recon, mu, logvar))

    assert recon.shape == (B, IN) and mu.shape == (B, LAT) and logvar.shape == (B, LAT)

    # Tight check against a reference with matching bf16 matmul numerics.
    r_bf, m_bf, lv_bf = reference_forward_bf16(x, params, eps)
    assert jnp.allclose(mu, m_bf, atol=1e-3, rtol=1e-3)
    assert jnp.allclose(logvar, lv_bf, atol=1e-3, rtol=1e-3)
    assert jnp.allclose(recon, r_bf, atol=1e-2, rtol=1e-2)   # approx reciprocal slack

    # Loose sanity check against the pure-f32 PyTorch-equivalent math.
    r_f, m_f, lv_f = reference_forward_f32(x, params, eps)
    assert jnp.allclose(mu, m_f, atol=3e-2, rtol=3e-2)
    assert jnp.allclose(logvar, lv_f, atol=3e-2, rtol=3e-2)
    assert jnp.allclose(recon, r_f, atol=3e-2, rtol=3e-2)

    print("KERNEL_OK")
</pallas_src>

<mosaic_0001>
module attributes {stable_mosaic.version = 11 : i64} {
  func.func @_vae_fwd_kernel(%arg0: i32, %arg1: memref<8x784xbf16, #tpu.memory_space<vmem>>, %arg2: memref<784x400xbf16, #tpu.memory_space<vmem>>, %arg3: memref<1x400xf32, #tpu.memory_space<vmem>>, %arg4: memref<400x128xbf16, #tpu.memory_space<vmem>>, %arg5: memref<1x128xf32, #tpu.memory_space<vmem>>, %arg6: memref<64x400xbf16, #tpu.memory_space<vmem>>, %arg7: memref<1x400xf32, #tpu.memory_space<vmem>>, %arg8: memref<400x784xbf16, #tpu.memory_space<vmem>>, %arg9: memref<1x784xf32, #tpu.memory_space<vmem>>, %arg10: memref<8x64xf32, #tpu.memory_space<vmem>>, %arg11: memref<8x784xf32, #tpu.memory_space<vmem>>, %arg12: memref<8x128xf32, #tpu.memory_space<vmem>>) attributes {dimension_semantics = [#tpu.dimension_semantics<parallel>], iteration_bounds = array<i64: 1>, scalar_prefetch = 0 : i64, scratch_operands = 0 : i64, tpu.core_type = #tpu.core_type<tc>, window_params = [{transform_indices = @transform_0, window_bounds = array<i64: 8, 784>}, {pipeline_mode = #tpu.pipeline_mode<synchronous>, transform_indices = @transform_1, window_bounds = array<i64: 784, 400>}, {pipeline_mode = #tpu.pipeline_mode<synchronous>, transform_indices = @transform_2, window_bounds = array<i64: 1, 400>}, {pipeline_mode = #tpu.pipeline_mode<synchronous>, transform_indices = @transform_3, window_bounds = array<i64: 400, 128>}, {pipeline_mode = #tpu.pipeline_mode<synchronous>, transform_indices = @transform_4, window_bounds = array<i64: 1, 128>}, {pipeline_mode = #tpu.pipeline_mode<synchronous>, transform_indices = @transform_5, window_bounds = array<i64: 64, 400>}, {pipeline_mode = #tpu.pipeline_mode<synchronous>, transform_indices = @transform_6, window_bounds = array<i64: 1, 400>}, {pipeline_mode = #tpu.pipeline_mode<synchronous>, transform_indices = @transform_7, window_bounds = array<i64: 400, 784>}, {pipeline_mode = #tpu.pipeline_mode<synchronous>, transform_indices = @transform_8, window_bounds = array<i64: 1, 784>}, {transform_indices = @transform_9, window_bounds = array<i64: 8, 64>}, {transform_indices = @transform_10, window_bounds = array<i64: 8, 784>}, {transform_indices = @transform_11, window_bounds = array<i64: 8, 128>}]} {
    %c0 = arith.constant 0 : index
    %c0_0 = arith.constant 0 : index
    %0 = vector.load %arg1[%c0, %c0_0] : memref<8x784xbf16, #tpu.memory_space<vmem>>, vector<8x784xbf16>
    %c0_1 = arith.constant 0 : index
    %c0_2 = arith.constant 0 : index
    %1 = vector.load %arg2[%c0_1, %c0_2] : memref<784x400xbf16, #tpu.memory_space<vmem>>, vector<784x400xbf16>
    %cst = arith.constant dense<0.000000e+00> : vector<8x400xf32>
    %2 = tpu.matmul %0, %1, %cst {dimension_numbers = #tpu.dot_dimension_numbers<[1], [0], [0], [1], [0, 0, 1, 1], [], []>} : vector<8x784xbf16>, vector<784x400xbf16>, vector<8x400xf32> -> vector<8x400xf32>
    %c0_3 = arith.constant 0 : index
    %c0_4 = arith.constant 0 : index
    %3 = vector.load %arg3[%c0_3, %c0_4] : memref<1x400xf32, #tpu.memory_space<vmem>>, vector<1x400xf32>
    %4 = vector.broadcast %3 : vector<1x400xf32> to vector<8x400xf32>
    %5 = arith.addf %2, %4 : vector<8x400xf32>
    %cst_5 = arith.constant 0.000000e+00 : f32
    %6 = vector.broadcast %cst_5 : f32 to vector<8x400xf32>
    %7 = arith.maximumf %5, %6 : vector<8x400xf32>
    %8 = arith.truncf %7 : vector<8x400xf32> to vector<8x400xbf16>
    %c0_6 = arith.constant 0 : index
    %c0_7 = arith.constant 0 : index
    %9 = vector.load %arg4[%c0_6, %c0_7] : memref<400x128xbf16, #tpu.memory_space<vmem>>, vector<400x128xbf16>
    %cst_8 = arith.constant dense<0.000000e+00> : vector<8x128xf32>
    %10 = tpu.matmul %8, %9, %cst_8 {dimension_numbers = #tpu.dot_dimension_numbers<[1], [0], [0], [1], [0, 0, 1, 1], [], []>} : vector<8x400xbf16>, vector<400x128xbf16>, vector<8x128xf32> -> vector<8x128xf32>
    %c0_9 = arith.constant 0 : index
    %c0_10 = arith.constant 0 : index
    %11 = vector.load %arg5[%c0_9, %c0_10] : memref<1x128xf32, #tpu.memory_space<vmem>>, vector<1x128xf32>
    %12 = vector.broadcast %11 : vector<1x128xf32> to vector<8x128xf32>
    %13 = arith.addf %10, %12 : vector<8x128xf32>
    %14 = vector.extract_strided_slice %13 {offsets = [0, 0], sizes = [8, 64], strides = [1, 1]} : vector<8x128xf32> to vector<8x64xf32>
    %15 = vector.extract_strided_slice %13 {offsets = [0, 64], sizes = [8, 64], strides = [1, 1]} : vector<8x128xf32> to vector<8x64xf32>
    %cst_11 = arith.constant 5.000000e-01 : f32
    %16 = vector.broadcast %cst_11 : f32 to vector<8x64xf32>
    %17 = arith.mulf %16, %15 : vector<8x64xf32>
    %18 = math.exp %17 : vector<8x64xf32>
    %c0_12 = arith.constant 0 : index
    %c0_13 = arith.constant 0 : index
    %19 = vector.load %arg10[%c0_12, %c0_13] : memref<8x64xf32, #tpu.memory_space<vmem>>, vector<8x64xf32>
    %20 = arith.mulf %18, %19 : vector<8x64xf32>
    %21 = arith.addf %20, %14 : vector<8x64xf32>
    %22 = arith.truncf %21 : vector<8x64xf32> to vector<8x64xbf16>
    %c0_14 = arith.constant 0 : index
    %c0_15 = arith.constant 0 : index
    %23 = vector.load %arg6[%c0_14, %c0_15] : memref<64x400xbf16, #tpu.memory_space<vmem>>, vector<64x400xbf16>
    %cst_16 = arith.constant dense<0.000000e+00> : vector<8x400xf32>
    %24 = tpu.matmul %22, %23, %cst_16 {dimension_numbers = #tpu.dot_dimension_numbers<[1], [0], [0], [1], [0, 0, 1, 1], [], []>} : vector<8x64xbf16>, vector<64x400xbf16>, vector<8x400xf32> -> vector<8x400xf32>
    %c0_17 = arith.constant 0 : index
    %c0_18 = arith.constant 0 : index
    %25 = vector.load %arg7[%c0_17, %c0_18] : memref<1x400xf32, #tpu.memory_space<vmem>>, vector<1x400xf32>
    %26 = vector.broadcast %25 : vector<1x400xf32> to vector<8x400xf32>
    %27 = arith.addf %24, %26 : vector<8x400xf32>
    %28 = arith.truncf %27 : vector<8x400xf32> to vector<8x400xbf16>
    %c0_19 = arith.constant 0 : index
    %c0_20 = arith.constant 0 : index
    %29 = vector.load %arg8[%c0_19, %c0_20] : memref<400x784xbf16, #tpu.memory_space<vmem>>, vector<400x784xbf16>
    %cst_21 = arith.constant dense<0.000000e+00> : vector<8x784xf32>
    %30 = tpu.matmul %28, %29, %cst_21 {dimension_numbers = #tpu.dot_dimension_numbers<[1], [0], [0], [1], [0, 0, 1, 1], [], []>} : vector<8x400xbf16>, vector<400x784xbf16>, vector<8x784xf32> -> vector<8x784xf32>
    %c0_22 = arith.constant 0 : index
    %c0_23 = arith.constant 0 : index
    %31 = vector.load %arg9[%c0_22, %c0_23] : memref<1x784xf32, #tpu.memory_space<vmem>>, vector<1x784xf32>
    %32 = vector.broadcast %31 : vector<1x784xf32> to vector<8x784xf32>
    %33 = arith.addf %30, %32 : vector<8x784xf32>
    %cst_24 = arith.constant 0.000000e+00 : f32
    %34 = vector.broadcast %cst_24 : f32 to vector<8x784xf32>
    %35 = arith.subf %34, %33 : vector<8x784xf32>
    %36 = math.exp %35 : vector<8x784xf32>
    %cst_25 = arith.constant 1.000000e+00 : f32
    %37 = vector.broadcast %cst_25 : f32 to vector<8x784xf32>
    %38 = arith.addf %37, %36 : vector<8x784xf32>
    %39 = tpu.reciprocal %38 {approx = true} : vector<8x784xf32> -> vector<8x784xf32>
    %c0_26 = arith.constant 0 : index
    %c0_27 = arith.constant 0 : index
    %40 = vector.load %arg11[%c0_26, %c0_27] : memref<8x784xf32, #tpu.memory_space<vmem>>, vector<8x784xf32>
    tpu.vector_store %arg11[%c0_26, %c0_27], %39 {strides = array<i32>} : memref<8x784xf32, #tpu.memory_space<vmem>>, vector<8x784xf32>,
    %c0_28 = arith.constant 0 : index
    %c0_29 = arith.constant 0 : index
    %41 = vector.load %arg12[%c0_28, %c0_29] : memref<8x128xf32, #tpu.memory_space<vmem>>, vector<8x128xf32>
    tpu.vector_store %arg12[%c0_28, %c0_29], %13 {strides = array<i32>} : memref<8x128xf32, #tpu.memory_space<vmem>>, vector<8x128xf32>,
    return
  }
  func.func @transform_0(%arg0: i32) -> (i32, i32) {
    %c0_i32 = arith.constant 0 : i32
    %c0_i32_0 = arith.constant 0 : i32
    return %arg0, %c0_i32 : i32, i32
  }
  func.func @transform_1(%arg0: i32) -> (i32, i32) {
    %c0_i32 = arith.constant 0 : i32
    %c0_i32_0 = arith.constant 0 : i32
    %c0_i32_1 = arith.constant 0 : i32
    return %c0_i32, %c0_i32_0 : i32, i32
  }
  func.func @transform_2(%arg0: i32) -> (i32, i32) {
    %c0_i32 = arith.constant 0 : i32
    %c0_i32_0 = arith.constant 0 : i32
    %c0_i32_1 = arith.constant 0 : i32
    return %c0_i32, %c0_i32_0 : i32, i32
  }
  func.func @transform_3(%arg0: i32) -> (i32, i32) {
    %c0_i32 = arith.constant 0 : i32
    %c0_i32_0 = arith.constant 0 : i32
    %c0_i32_1 = arith.constant 0 : i32
    return %c0_i32, %c0_i32_0 : i32, i32
  }
  func.func @transform_4(%arg0: i32) -> (i32, i32) {
    %c0_i32 = arith.constant 0 : i32
    %c0_i32_0 = arith.constant 0 : i32
    %c0_i32_1 = arith.constant 0 : i32
    return %c0_i32, %c0_i32_0 : i32, i32
  }
  func.func @transform_5(%arg0: i32) -> (i32, i32) {
    %c0_i32 = arith.constant 0 : i32
    %c0_i32_0 = arith.constant 0 : i32
    %c0_i32_1 = arith.constant 0 : i32
    return %c0_i32, %c0_i32_0 : i32, i32
  }
  func.func @transform_6(%arg0: i32) -> (i32, i32) {
    %c0_i32 = arith.constant 0 : i32
    %c0_i32_0 = arith.constant 0 : i32
    %c0_i32_1 = arith.constant 0 : i32
    return %c0_i32, %c0_i32_0 : i32, i32
  }
  func.func @transform_7(%arg0: i32) -> (i32, i32) {
    %c0_i32 = arith.constant 0 : i32
    %c0_i32_0 = arith.constant 0 : i32
    %c0_i32_1 = arith.constant 0 : i32
    return %c0_i32, %c0_i32_0 : i32, i32
  }
  func.func @transform_8(%arg0: i32) -> (i32, i32) {
    %c0_i32 = arith.constant 0 : i32
    %c0_i32_0 = arith.constant 0 : i32
    %c0_i32_1 = arith.constant 0 : i32
    return %c0_i32, %c0_i32_0 : i32, i32
  }
  func.func @transform_9(%arg0: i32) -> (i32, i32) {
    %c0_i32 = arith.constant 0 : i32
    %c0_i32_0 = arith.constant 0 : i32
    return %arg0, %c0_i32 : i32, i32
  }
  func.func @transform_10(%arg0: i32) -> (i32, i32) {
    %c0_i32 = arith.constant 0 : i32
    %c0_i32_0 = arith.constant 0 : i32
    return %arg0, %c0_i32 : i32, i32
  }
  func.func @transform_11(%arg0: i32) -> (i32, i32) {
    %c0_i32 = arith.constant 0 : i32
    %c0_i32_0 = arith.constant 0 : i32
    return %arg0, %c0_i32 : i32, i32
  }
}

</mosaic_0001>

<bundles_post_ra>
// kernel: vae_forward.1
= control target key start
LH: loop header
LB: loop body
LE: loop exit
PB: predicated region body
PF: predicated region fallthrough
CT: control target
= control target key end

     0   :  { %vm1265_vm0 = vcmask 130048   ;;  %s6280_s0 = inlined_call_operand.vmem [shape: bf16[8,784], index: 0, kind: input, shape index: {}]   ;;  %s6281_s1 = inlined_call_operand.vmem [shape: bf16[784,400], index: 1, kind: input, shape index: {}]   ;;  %s6282_s2 = inlined_call_operand.vmem [shape: f32[1,400], index: 2, kind: input, shape index: {}]   ;;  %s6283_s3 = inlined_call_operand.vmem [shape: bf16[400,128], index: 3, kind: input, shape index: {}]   ;;  %s6284_s4 = inlined_call_operand.vmem [shape: f32[1,128], index: 4, kind: input, shape index: {}]   ;;  %s6285_s5 = inlined_call_operand.vmem [shape: bf16[64,400], index: 5, kind: input, shape index: {}]   ;;  %s6286_s6 = inlined_call_operand.vmem [shape: f32[1,400], index: 6, kind: input, shape index: {}]   ;;  %s6287_s7 = inlined_call_operand.vmem [shape: bf16[400,784], index: 7, kind: input, shape index: {}]   ;;  %s6288_s8 = inlined_call_operand.vmem [shape: f32[1,784], index: 8, kind: input, shape index: {}]   ;;  %s6289_s9 = inlined_call_operand.vmem [shape: f32[8,64], index: 9, kind: input, shape index: {}]   ;;  %s6290_s10 = inlined_call_operand.hbm [shape: f32[8,784], index: 10, kind: output, shape index: {0}]   ;;  %s6291_s11 = inlined_call_operand.vmem [shape: f32[8,128], index: 11, kind: output, shape index: {1}]  }
   0x1   :  { %v4170_v0 = vld [vmem:[%s6281_s1 + $0x4] ss:$16 sps:$4 sm:$0xff]   ;;  %v4172_v1 = vld [vmem:[%s6281_s1 + $0xc] ss:$16 sps:$4 sm:$0xff]   ;;  %v4174_v2 = vld [vmem:[%s6281_s1] ss:$16 sps:$4 sm:$0xff]  }
   0x2   :  { %1269 = vmatprep.subr.bf16.mxu0 %v4170_v0  ;;  %v4175_v3 = vld [vmem:[%s6281_s1 + $0x8] ss:$16 sps:$4 sm:$0xff]   ;;  %1433 = vmatprep.subr.bf16.mxu1 %v4172_v1  ;;  %v4176_v4 = vld [vmem:[%s6281_s1 + $0x24] ss:$16 sps:$4 sm:$0xff]   ;;  %v4178_v5 = vld [vmem:[%s6281_s1 + $0x2c] ss:$16 sps:$4 sm:$0xff]  }
   0x3   :  { %1270 = vmatpush1.bf16.msra.mxu0 %v4174_v2  ;;  %1434 = vmatpush1.bf16.msra.mxu1 %v4175_v3  ;;  %v4180_v6 = vld [vmem:[%s6281_s1 + $0x20] ss:$16 sps:$4 sm:$0xff]   ;;  %v4181_v7 = vld [vmem:[%s6281_s1 + $0x28] ss:$16 sps:$4 sm:$0xff]   ;;  %v4182_v8 = vld [vmem:[%s6281_s1 + $0x44] ss:$16 sps:$4 sm:$0xff]  }
   0x4   :  { %1271 = vmatprep.subr.bf16.mxu0 %v4176_v4  ;;  %1435 = vmatprep.subr.bf16.mxu1 %v4178_v5  ;;  %v4184_v9 = vld [vmem:[%s6281_s1 + $0x4c] ss:$16 sps:$4 sm:$0xff]   ;;  %v4186_v10 = vld [vmem:[%s6281_s1 + $0x40] ss:$16 sps:$4 sm:$0xff]   ;;  %v4187_v11 = vld [vmem:[%s6281_s1 + $0x48] ss:$16 sps:$4 sm:$0xff]  }
   0x5   :  { %v4188_v12 = vld [vmem:[%s6281_s1 + $0x64] ss:$16 sps:$4 sm:$0xff]   ;;  %v4190_v13 = vld [vmem:[%s6281_s1 + $0x6c] ss:$16 sps:$4 sm:$0xff]   ;;  %v4192_v14 = vld [vmem:[%s6281_s1 + $0x60] ss:$16 sps:$4 sm:$0xff]  }
   0x6   :  { %v4193_v15 = vld [vmem:[%s6281_s1 + $0x68] ss:$16 sps:$4 sm:$0xff]   ;;  %v4194_v16 = vld [vmem:[%s6281_s1 + $0x84] ss:$16 sps:$4 sm:$0xff]   ;;  %v4196_v17 = vld [vmem:[%s6281_s1 + $0x8c] ss:$16 sps:$4 sm:$0xff]  }
   0x7   :  { %1272 = vmatpush1.bf16.msra.mxu0 %v4180_v6  ;;  %1436 = vmatpush1.bf16.msra.mxu1 %v4181_v7  ;;  %v4198_v18 = vld [vmem:[%s6281_s1 + $0x80] ss:$16 sps:$4 sm:$0xff]   ;;  %v4199_v19 = vld [vmem:[%s6281_s1 + $0x88] ss:$16 sps:$4 sm:$0xff]   ;;  %v4200_v20 = vld [vmem:[%s6281_s1 + $0xa4] ss:$16 sps:$4 sm:$0xff]  }
   0x8   :  { %1273 = vmatprep.subr.bf16.mxu0 %v4182_v8  ;;  %1437 = vmatprep.subr.bf16.mxu1 %v4184_v9  ;;  %v4202_v21 = vld [vmem:[%s6281_s1 + $0xac] ss:$16 sps:$4 sm:$0xff]   ;;  %v4204_v22 = vld [vmem:[%s6281_s1 + $0xa0] ss:$16 sps:$4 sm:$0xff]   ;;  %v4205_v23 = vld [vmem:[%s6281_s1 + $0xa8] ss:$16 sps:$4 sm:$0xff]  }
   0x9   :  { %v4206_v24 = vld [vmem:[%s6281_s1 + $0xc4] ss:$16 sps:$4 sm:$0xff]   ;;  %v4208_v25 = vld [vmem:[%s6281_s1 + $0xcc] ss:$16 sps:$4 sm:$0xff]   ;;  %v4210_v26 = vld [vmem:[%s6281_s1 + $0xc0] ss:$16 sps:$4 sm:$0xff]  }
   0xa   :  { %v4211_v27 = vld [vmem:[%s6281_s1 + $0xc8] ss:$16 sps:$4 sm:$0xff]   ;;  %v4212_v28 = vld [vmem:[%s6281_s1 + $0xe4] ss:$16 sps:$4 sm:$0xff]   ;;  %v4214_v29 = vld [vmem:[%s6281_s1 + $0xec] ss:$16 sps:$4 sm:$0xff]  }
   0xb   :  { %1274 = vmatpush1.bf16.msra.mxu0 %v4186_v10  ;;  %1438 = vmatpush1.bf16.msra.mxu1 %v4187_v11  ;;  %v4216_v30 = vld [vmem:[%s6281_s1 + $0xe0] ss:$16 sps:$4 sm:$0xff]   ;;  %v4217_v31 = vld [vmem:[%s6281_s1 + $0xe8] ss:$16 sps:$4 sm:$0xff]   ;;  %v4218_v32 = vld [vmem:[%s6281_s1 + $0x104] ss:$16 sps:$4 sm:$0xff]  }
   0xc   :  { %1275 = vmatprep.subr.bf16.mxu0 %v4188_v12  ;;  %1439 = vmatprep.subr.bf16.mxu1 %v4190_v13  ;;  %v4220_v33 = vld [vmem:[%s6281_s1 + $0x10c] ss:$16 sps:$4 sm:$0xff]   ;;  %v4222_v34 = vld [vmem:[%s6281_s1 + $0x100] ss:$16 sps:$4 sm:$0xff]   ;;  %v4223_v35 = vld [vmem:[%s6281_s1 + $0x108] ss:$16 sps:$4 sm:$0xff]  }
   0xd   :  { %v4224_v36 = vld [vmem:[%s6281_s1 + $0x124] ss:$16 sps:$4 sm:$0xff]   ;;  %v4226_v37 = vld [vmem:[%s6281_s1 + $0x12c] ss:$16 sps:$4 sm:$0xff]   ;;  %v4228_v38 = vld [vmem:[%s6281_s1 + $0x120] ss:$16 sps:$4 sm:$0xff]  }
   0xe   :  { %v4229_v39 = vld [vmem:[%s6281_s1 + $0x128] ss:$16 sps:$4 sm:$0xff]   ;;  %v4230_v40 = vld [vmem:[%s6281_s1 + $0x144] ss:$16 sps:$4 sm:$0xff]   ;;  %v4232_v41 = vld [vmem:[%s6281_s1 + $0x14c] ss:$16 sps:$4 sm:$0xff]  }
   0xf   :  { %1276 = vmatpush1.bf16.msra.mxu0 %v4192_v14  ;;  %1440 = vmatpush1.bf16.msra.mxu1 %v4193_v15  ;;  %v4234_v42 = vld [vmem:[%s6281_s1 + $0x140] ss:$16 sps:$4 sm:$0xff]   ;;  %v4235_v43 = vld [vmem:[%s6281_s1 + $0x148] ss:$16 sps:$4 sm:$0xff]   ;;  %v4236_v44 = vld [vmem:[%s6281_s1 + $0x164] ss:$16 sps:$4 sm:$0xff]  }
  0x10   :  { %1277 = vmatprep.subr.bf16.mxu0 %v4194_v16  ;;  %1441 = vmatprep.subr.bf16.mxu1 %v4196_v17  ;;  %v4238_v45 = vld [vmem:[%s6281_s1 + $0x16c] ss:$16 sps:$4 sm:$0xff]   ;;  %v39_v46 = vld [vmem:[%s6280_s0] sm:$0xff]  ;;  %v4241_v49 = vld [vmem:[%s6281_s1 + $0x168] ss:$16 sps:$4 sm:$0xff]  }
  0x11   :  { %v4240_v47 = vld [vmem:[%s6281_s1 + $0x160] ss:$16 sps:$4 sm:$0xff]   ;;  %v3649_v48 = vcombine.high %v39_v46, %v39_v46  ;;  %v4242_v50 = vld [vmem:[%s6281_s1 + $0x184] ss:$16 sps:$4 sm:$0xff]   ;;  %v4244_v51 = vld [vmem:[%s6281_s1 + $0x18c] ss:$16 sps:$4 sm:$0xff]   ;;  %v3648_v4 = vcombine.low %v39_v46, %v39_v46 }
  0x12   :  { %v4246_v52 = vld [vmem:[%s6281_s1 + $0x180] ss:$16 sps:$4 sm:$0xff]   ;;  %v4247_v53 = vld [vmem:[%s6281_s1 + $0x188] ss:$16 sps:$4 sm:$0xff]   ;;  %v4248_v54 = vld [vmem:[%s6281_s1 + $0x1a4] ss:$16 sps:$4 sm:$0xff]  }
  0x13   :  { %1278 = vmatpush1.bf16.msra.mxu0 %v4198_v18  ;;  %1442 = vmatpush1.bf16.msra.mxu1 %v4199_v19  ;;  %v4250_v55 = vld [vmem:[%s6281_s1 + $0x1ac] ss:$16 sps:$4 sm:$0xff]   ;;  %v4252_v56 = vld [vmem:[%s6281_s1 + $0x1a0] ss:$16 sps:$4 sm:$0xff]   ;;  %v4253_v57 = vld [vmem:[%s6281_s1 + $0x1a8] ss:$16 sps:$4 sm:$0xff]  }
  0x14   :  { %1279 = vmatprep.subr.bf16.mxu0 %v4200_v20  ;;  %1443 = vmatprep.subr.bf16.mxu1 %v4202_v21  ;;  %v4254_v58 = vld [vmem:[%s6281_s1 + $0x1c4] ss:$16 sps:$4 sm:$0xff]   ;;  %v4256_v59 = vld [vmem:[%s6281_s1 + $0x1cc] ss:$16 sps:$4 sm:$0xff]   ;;  %v4258_v60 = vld [vmem:[%s6281_s1 + $0x1c0] ss:$16 sps:$4 sm:$0xff]  }
  0x15   :  { %1301 = vmatprep.mubr.bf16.mxu0 %v3649_v48  ;;  %1465 = vmatprep.mubr.bf16.mxu1 %v3649_v48  ;;  %v4259_v61 = vld [vmem:[%s6281_s1 + $0x1c8] ss:$16 sps:$4 sm:$0xff]   ;;  %v4260_v62 = vld [vmem:[%s6281_s1 + $0x1e4] ss:$16 sps:$4 sm:$0xff]   ;;  %v4262_v63 = vld [vmem:[%s6281_s1 + $0x1ec] ss:$16 sps:$4 sm:$0xff]  }
  0x16   :  { %v4264_v0 = vld [vmem:[%s6281_s1 + $0x1e0] ss:$16 sps:$4 sm:$0xff]   ;;  %v4265_v1 = vld [vmem:[%s6281_s1 + $0x1e8] ss:$16 sps:$4 sm:$0xff]   ;;  %v4270_v2 = vld [vmem:[%s6281_s1 + $0x204] ss:$16 sps:$4 sm:$0xff]  }
  0x17   :  { %1280 = vmatpush1.bf16.msra.mxu0 %v4204_v22  ;;  %1444 = vmatpush1.bf16.msra.mxu1 %v4205_v23  ;;  %v4273_v3 = vld [vmem:[%s6281_s1 + $0x20c] ss:$16 sps:$4 sm:$0xff]   ;;  %v4268_v5 = vld [vmem:[%s6281_s1 + $0x200] ss:$16 sps:$4 sm:$0xff]   ;;  %v4271_v6 = vld [vmem:[%s6281_s1 + $0x208] ss:$16 sps:$4 sm:$0xff]  }
  0x18   :  { %1281 = vmatprep.subr.bf16.mxu0 %v4206_v24  ;;  %1445 = vmatprep.subr.bf16.mxu1 %v4208_v25  ;;  %v4276_v7 = vld [vmem:[%s6281_s1 + $0x224] ss:$16 sps:$4 sm:$0xff]   ;;  %v4279_v8 = vld [vmem:[%s6281_s1 + $0x22c] ss:$16 sps:$4 sm:$0xff]   ;;  %v4274_v9 = vld [vmem:[%s6281_s1 + $0x220] ss:$16 sps:$4 sm:$0xff]  }
  0x19   :  { %v4277_v10 = vld [vmem:[%s6281_s1 + $0x228] ss:$16 sps:$4 sm:$0xff]   ;;  %v4282_v11 = vld [vmem:[%s6281_s1 + $0x244] ss:$16 sps:$4 sm:$0xff]   ;;  %v4285_v12 = vld [vmem:[%s6281_s1 + $0x24c] ss:$16 sps:$4 sm:$0xff]  }
  0x1a   :  { %v4280_v13 = vld [vmem:[%s6281_s1 + $0x240] ss:$16 sps:$4 sm:$0xff]   ;;  %v4283_v14 = vld [vmem:[%s6281_s1 + $0x248] ss:$16 sps:$4 sm:$0xff]   ;;  %v4288_v15 = vld [vmem:[%s6281_s1 + $0x264] ss:$16 sps:$4 sm:$0xff]  }
  0x1b   :  { %1282 = vmatpush1.bf16.msra.mxu0 %v4210_v26  ;;  %1446 = vmatpush1.bf16.msra.mxu1 %v4211_v27  ;;  %v4291_v16 = vld [vmem:[%s6281_s1 + $0x26c] ss:$16 sps:$4 sm:$0xff]   ;;  %v4286_v17 = vld [vmem:[%s6281_s1 + $0x260] ss:$16 sps:$4 sm:$0xff]   ;;  %v4289_v18 = vld [vmem:[%s6281_s1 + $0x268] ss:$16 sps:$4 sm:$0xff]  }
  0x1c   :  { %1283 = vmatprep.subr.bf16.mxu0 %v4212_v28  ;;  %1447 = vmatprep.subr.bf16.mxu1 %v4214_v29  ;;  %v4294_v19 = vld [vmem:[%s6281_s1 + $0x284] ss:$16 sps:$4 sm:$0xff]   ;;  %v4297_v20 = vld [vmem:[%s6281_s1 + $0x28c] ss:$16 sps:$4 sm:$0xff]   ;;  %v4292_v21 = vld [vmem:[%s6281_s1 + $0x280] ss:$16 sps:$4 sm:$0xff]  }
  0x1d   :  { %v4295_v22 = vld [vmem:[%s6281_s1 + $0x288] ss:$16 sps:$4 sm:$0xff]   ;;  %v4300_v23 = vld [vmem:[%s6281_s1 + $0x2a4] ss:$16 sps:$4 sm:$0xff]   ;;  %v4303_v24 = vld [vmem:[%s6281_s1 + $0x2ac] ss:$16 sps:$4 sm:$0xff]  }
  0x1e   :  { %v4298_v25 = vld [vmem:[%s6281_s1 + $0x2a0] ss:$16 sps:$4 sm:$0xff]   ;;  %v4301_v26 = vld [vmem:[%s6281_s1 + $0x2a8] ss:$16 sps:$4 sm:$0xff]   ;;  %v4306_v27 = vld [vmem:[%s6281_s1 + $0x2c4] ss:$16 sps:$4 sm:$0xff]  }
  0x1f   :  { %1284 = vmatpush1.bf16.msra.mxu0 %v4216_v30  ;;  %1448 = vmatpush1.bf16.msra.mxu1 %v4217_v31  ;;  %v4309_v28 = vld [vmem:[%s6281_s1 + $0x2cc] ss:$16 sps:$4 sm:$0xff]   ;;  %v4304_v31 = vld [vmem:[%s6281_s1 + $0x2c0] ss:$16 sps:$4 sm:$0xff]   ;;  %v4331_v48 = vld [vmem:[%s6281_s1 + $0x348] ss:$16 sps:$4 sm:$0xff]  }
  0x20   :  { %1285 = vmatprep.subr.bf16.mxu0 %v4218_v32  ;;  %1449 = vmatprep.subr.bf16.mxu1 %v4220_v33  ;;  %v5163_v29 = vld [vmem:[%s6280_s0 + $0x8] sm:$0xff]  ;;  %v4312_v33 = vld [vmem:[%s6281_s1 + $0x2e4] ss:$16 sps:$4 sm:$0xff]  }
  0x21   :  { %v3651_v30 = vcombine.high %v5163_v29, %v5163_v29  ;;  %v4307_v32 = vld [vmem:[%s6281_s1 + $0x2c8] ss:$16 sps:$4 sm:$0xff]   ;;  %v4333_v46 = vld [vmem:[%s6281_s1 + $0x34c] ss:$16 sps:$4 sm:$0xff]  }
  0x23   :  { %1286 = vmatpush1.bf16.msra.mxu0 %v4222_v34  ;;  %1450 = vmatpush1.bf16.msra.mxu1 %v4223_v35  ;;  %v4315_v34 = vld [vmem:[%s6281_s1 + $0x2ec] ss:$16 sps:$4 sm:$0xff]   ;;  %v4310_v35 = vld [vmem:[%s6281_s1 + $0x2e0] ss:$16 sps:$4 sm:$0xff]  }
  0x24   :  { %1287 = vmatprep.subr.bf16.mxu0 %v4224_v36  ;;  %1451 = vmatprep.subr.bf16.mxu1 %v4226_v37  ;;  %v4313_v36 = vld [vmem:[%s6281_s1 + $0x2e8] ss:$16 sps:$4 sm:$0xff]   ;;  %v4318_v37 = vld [vmem:[%s6281_s1 + $0x304] ss:$16 sps:$4 sm:$0xff]  }
  0x27   :  { %1288 = vmatpush1.bf16.msra.mxu0 %v4228_v38  ;;  %1452 = vmatpush1.bf16.msra.mxu1 %v4229_v39  ;;  %v4321_v38 = vld [vmem:[%s6281_s1 + $0x30c] ss:$16 sps:$4 sm:$0xff]   ;;  %v4316_v39 = vld [vmem:[%s6281_s1 + $0x300] ss:$16 sps:$4 sm:$0xff]  }
  0x28   :  { %1289 = vmatprep.subr.bf16.mxu0 %v4230_v40  ;;  %1453 = vmatprep.subr.bf16.mxu1 %v4232_v41  ;;  %v4319_v40 = vld [vmem:[%s6281_s1 + $0x308] ss:$16 sps:$4 sm:$0xff]   ;;  %v4324_v41 = vld [vmem:[%s6281_s1 + $0x324] ss:$16 sps:$4 sm:$0xff]  }
  0x2b   :  { %1290 = vmatpush1.bf16.msra.mxu0 %v4234_v42  ;;  %1454 = vmatpush1.bf16.msra.mxu1 %v4235_v43  ;;  %v4327_v42 = vld [vmem:[%s6281_s1 + $0x32c] ss:$16 sps:$4 sm:$0xff]   ;;  %v4322_v43 = vld [vmem:[%s6281_s1 + $0x320] ss:$16 sps:$4 sm:$0xff]  }
  0x2c   :  { %1291 = vmatprep.subr.bf16.mxu0 %v4236_v44  ;;  %1455 = vmatprep.subr.bf16.mxu1 %v4238_v45  ;;  %v4325_v44 = vld [vmem:[%s6281_s1 + $0x328] ss:$16 sps:$4 sm:$0xff]   ;;  %v4330_v45 = vld [vmem:[%s6281_s1 + $0x344] ss:$16 sps:$4 sm:$0xff]  }
  0x2f   :  { %1292 = vmatpush1.bf16.msra.mxu0 %v4240_v47  ;;  %1456 = vmatpush1.bf16.msra.mxu1 %v4241_v49  ;;  %v4328_v47 = vld [vmem:[%s6281_s1 + $0x340] ss:$16 sps:$4 sm:$0xff]   ;;  %v4336_v49 = vld [vmem:[%s6281_s1 + $0x364] ss:$16 sps:$4 sm:$0xff]  }
  0x30   :  { %1293 = vmatprep.subr.bf16.mxu0 %v4242_v50  ;;  %1457 = vmatprep.subr.bf16.mxu1 %v4244_v51  ;;  %v4339_v50 = vld [vmem:[%s6281_s1 + $0x36c] ss:$16 sps:$4 sm:$0xff]   ;;  %v4334_v51 = vld [vmem:[%s6281_s1 + $0x360] ss:$16 sps:$4 sm:$0xff]  }
  0x33   :  { %1294 = vmatpush1.bf16.msra.mxu0 %v4246_v52  ;;  %1458 = vmatpush1.bf16.msra.mxu1 %v4247_v53  ;;  %v4337_v52 = vld [vmem:[%s6281_s1 + $0x368] ss:$16 sps:$4 sm:$0xff]   ;;  %v4342_v53 = vld [vmem:[%s6281_s1 + $0x384] ss:$16 sps:$4 sm:$0xff]  }
  0x34   :  { %1295 = vmatprep.subr.bf16.mxu0 %v4248_v54  ;;  %1459 = vmatprep.subr.bf16.mxu1 %v4250_v55  ;;  %v4345_v54 = vld [vmem:[%s6281_s1 + $0x38c] ss:$16 sps:$4 sm:$0xff]   ;;  %v4340_v55 = vld [vmem:[%s6281_s1 + $0x380] ss:$16 sps:$4 sm:$0xff]  }
  0x37   :  { %1296 = vmatpush1.bf16.msra.mxu0 %v4252_v56  ;;  %1460 = vmatpush1.bf16.msra.mxu1 %v4253_v57  ;;  %v4343_v56 = vld [vmem:[%s6281_s1 + $0x388] ss:$16 sps:$4 sm:$0xff]   ;;  %v4348_v57 = vld [vmem:[%s6281_s1 + $0x3a4] ss:$16 sps:$4 sm:$0xff]  }
  0x38   :  { %1297 = vmatprep.subr.bf16.mxu0 %v4254_v58  ;;  %1461 = vmatprep.subr.bf16.mxu1 %v4256_v59  ;;  %v4351_v58 = vld [vmem:[%s6281_s1 + $0x3ac] ss:$16 sps:$4 sm:$0xff]   ;;  %v4346_v59 = vld [vmem:[%s6281_s1 + $0x3a0] ss:$16 sps:$4 sm:$0xff]  }
  0x3b   :  { %1298 = vmatpush1.bf16.msra.mxu0 %v4258_v60  ;;  %1462 = vmatpush1.bf16.msra.mxu1 %v4259_v61  ;;  %v4349_v60 = vld [vmem:[%s6281_s1 + $0x3a8] ss:$16 sps:$4 sm:$0xff]   ;;  %v4354_v61 = vld [vmem:[%s6281_s1 + $0x3c4] ss:$16 sps:$4 sm:$0xff]  }
  0x3c   :  { %1299 = vmatprep.subr.bf16.mxu0 %v4260_v62  ;;  %1463 = vmatprep.subr.bf16.mxu1 %v4262_v63  ;;  %v4357_v62 = vld [vmem:[%s6281_s1 + $0x3cc] ss:$16 sps:$4 sm:$0xff]   ;;  %v4352_v63 = vld [vmem:[%s6281_s1 + $0x3c0] ss:$16 sps:$4 sm:$0xff]  }
  0x3f   :  { %1300 = vmatpush1.bf16.msra.mxu0 %v4264_v0  ;;  %1464 = vmatpush1.bf16.msra.mxu1 %v4265_v1  ;;  %v4355_v0 = vld [vmem:[%s6281_s1 + $0x3c8] ss:$16 sps:$4 sm:$0xff]   ;;  %v4360_v1 = vld [vmem:[%s6281_s1 + $0x3e4] ss:$16 sps:$4 sm:$0xff]  }
  0x40   :  { %1310 = vmatprep.subr.bf16.mxu0 %v4270_v2  ;;  %1474 = vmatprep.subr.bf16.mxu1 %v4273_v3  ;;  %v4363_v2 = vld [vmem:[%s6281_s1 + $0x3ec] ss:$16 sps:$4 sm:$0xff]   ;;  %v4358_v3 = vld [vmem:[%s6281_s1 + $0x3e0] ss:$16 sps:$4 sm:$0xff]  }
  0x42   :  { %1302 = vmatmul.mubr.bf16.vlgmr.msra.gmra.mrb[0].mxu0 %v3648_v4  ;;  %1466 = vmatmul.mubr.bf16.vlgmr.msra.gmra.mrb[0].mxu1 %v3648_v4  ;;  %v4361_v4 = vld [vmem:[%s6281_s1 + $0x3e8] ss:$16 sps:$4 sm:$0xff]  }
  0x43   :  { %1311 = vmatpush1.bf16.msra.mxu0 %v4268_v5  ;;  %1475 = vmatpush1.bf16.msra.mxu1 %v4271_v6  ;;  %v4368_v5 = vld [vmem:[%s6281_s1 + $0x404] ss:$16 sps:$4 sm:$0xff]   ;;  %v4371_v6 = vld [vmem:[%s6281_s1 + $0x40c] ss:$16 sps:$4 sm:$0xff]  }
  0x44   :  { %1312 = vmatprep.subr.bf16.mxu0 %v4276_v7  ;;  %1476 = vmatprep.subr.bf16.mxu1 %v4279_v8  ;;  %v3650_v7 = vcombine.low %v5163_v29, %v5163_v29  ;;  %v4366_v8 = vld [vmem:[%s6281_s1 + $0x400] ss:$16 sps:$4 sm:$0xff]   ;;  %v4401_v29 = vld [vmem:[%s6281_s1 + $0x4ac] ss:$16 sps:$4 sm:$0xff]  }
  0x45   :  { %1342 = vmatprep.mubr.bf16.mxu0 %v3651_v30  ;;  %1506 = vmatprep.mubr.bf16.mxu1 %v3651_v30  ;;  %v4396_v30 = vld [vmem:[%s6281_s1 + $0x4a0] ss:$16 sps:$4 sm:$0xff]  }
  0x47   :  { %1313 = vmatpush1.bf16.msra.mxu0 %v4274_v9  ;;  %1477 = vmatpush1.bf16.msra.mxu1 %v4277_v10  ;;  %v4369_v9 = vld [vmem:[%s6281_s1 + $0x408] ss:$16 sps:$4 sm:$0xff]   ;;  %v4374_v10 = vld [vmem:[%s6281_s1 + $0x424] ss:$16 sps:$4 sm:$0xff]  }
  0x48   :  { %1314 = vmatprep.subr.bf16.mxu0 %v4282_v11  ;;  %1478 = vmatprep.subr.bf16.mxu1 %v4285_v12  ;;  %v5301_v11 = vld [vmem:[%s6280_s0 + $0x10] sm:$0xff]  ;;  %v4377_v12 = vld [vmem:[%s6281_s1 + $0x42c] ss:$16 sps:$4 sm:$0xff]  }
  0x4b   :  { %1315 = vmatpush1.bf16.msra.mxu0 %v4280_v13  ;;  %1479 = vmatpush1.bf16.msra.mxu1 %v4283_v14  ;;  %v3653_v13 = vcombine.high %v5301_v11, %v5301_v11  ;;  %v4372_v14 = vld [vmem:[%s6281_s1 + $0x420] ss:$16 sps:$4 sm:$0xff]  }
  0x4c   :  { %1316 = vmatprep.subr.bf16.mxu0 %v4288_v15  ;;  %1480 = vmatprep.subr.bf16.mxu1 %v4291_v16  ;;  %v4375_v15 = vld [vmem:[%s6281_s1 + $0x428] ss:$16 sps:$4 sm:$0xff]   ;;  %v4380_v16 = vld [vmem:[%s6281_s1 + $0x444] ss:$16 sps:$4 sm:$0xff]  }
  0x4f   :  { %1317 = vmatpush1.bf16.msra.mxu0 %v4286_v17  ;;  %1481 = vmatpush1.bf16.msra.mxu1 %v4289_v18  ;;  %v4383_v17 = vld [vmem:[%s6281_s1 + $0x44c] ss:$16 sps:$4 sm:$0xff]   ;;  %v4378_v18 = vld [vmem:[%s6281_s1 + $0x440] ss:$16 sps:$4 sm:$0xff]  }
  0x50   :  { %1318 = vmatprep.subr.bf16.mxu0 %v4294_v19  ;;  %1482 = vmatprep.subr.bf16.mxu1 %v4297_v20  ;;  %v4381_v19 = vld [vmem:[%s6281_s1 + $0x448] ss:$16 sps:$4 sm:$0xff]   ;;  %v4386_v20 = vld [vmem:[%s6281_s1 + $0x464] ss:$16 sps:$4 sm:$0xff]  }
  0x53   :  { %1319 = vmatpush1.bf16.msra.mxu0 %v4292_v21  ;;  %1483 = vmatpush1.bf16.msra.mxu1 %v4295_v22  ;;  %v4389_v21 = vld [vmem:[%s6281_s1 + $0x46c] ss:$16 sps:$4 sm:$0xff]   ;;  %v4384_v22 = vld [vmem:[%s6281_s1 + $0x460] ss:$16 sps:$4 sm:$0xff]  }
  0x54   :  { %1320 = vmatprep.subr.bf16.mxu0 %v4300_v23  ;;  %1484 = vmatprep.subr.bf16.mxu1 %v4303_v24  ;;  %v4387_v23 = vld [vmem:[%s6281_s1 + $0x468] ss:$16 sps:$4 sm:$0xff]   ;;  %v4392_v24 = vld [vmem:[%s6281_s1 + $0x484] ss:$16 sps:$4 sm:$0xff]  }
  0x57   :  { %1321 = vmatpush1.bf16.msra.mxu0 %v4298_v25  ;;  %1485 = vmatpush1.bf16.msra.mxu1 %v4301_v26  ;;  %v4395_v25 = vld [vmem:[%s6281_s1 + $0x48c] ss:$16 sps:$4 sm:$0xff]   ;;  %v4390_v26 = vld [vmem:[%s6281_s1 + $0x480] ss:$16 sps:$4 sm:$0xff]  }
  0x58   :  { %1322 = vmatprep.subr.bf16.mxu0 %v4306_v27  ;;  %1486 = vmatprep.subr.bf16.mxu1 %v4309_v28  ;;  %v4393_v27 = vld [vmem:[%s6281_s1 + $0x488] ss:$16 sps:$4 sm:$0xff]   ;;  %v4398_v28 = vld [vmem:[%s6281_s1 + $0x4a4] ss:$16 sps:$4 sm:$0xff]  }
  0x5b   :  { %1323 = vmatpush1.bf16.msra.mxu0 %v4304_v31  ;;  %1487 = vmatpush1.bf16.msra.mxu1 %v4307_v32  ;;  %v4399_v31 = vld [vmem:[%s6281_s1 + $0x4a8] ss:$16 sps:$4 sm:$0xff]   ;;  %v4404_v32 = vld [vmem:[%s6281_s1 + $0x4c4] ss:$16 sps:$4 sm:$0xff]  }
  0x5c   :  { %1324 = vmatprep.subr.bf16.mxu0 %v4312_v33  ;;  %1488 = vmatprep.subr.bf16.mxu1 %v4315_v34  ;;  %v4407_v33 = vld [vmem:[%s6281_s1 + $0x4cc] ss:$16 sps:$4 sm:$0xff]   ;;  %v4402_v34 = vld [vmem:[%s6281_s1 + $0x4c0] ss:$16 sps:$4 sm:$0xff]  }
  0x5f   :  { %1325 = vmatpush1.bf16.msra.mxu0 %v4310_v35  ;;  %1489 = vmatpush1.bf16.msra.mxu1 %v4313_v36  ;;  %v4405_v35 = vld [vmem:[%s6281_s1 + $0x4c8] ss:$16 sps:$4 sm:$0xff]   ;;  %v4410_v36 = vld [vmem:[%s6281_s1 + $0x4e4] ss:$16 sps:$4 sm:$0xff]  }
  0x60   :  { %1326 = vmatprep.subr.bf16.mxu0 %v4318_v37  ;;  %1490 = vmatprep.subr.bf16.mxu1 %v4321_v38  ;;  %v4413_v37 = vld [vmem:[%s6281_s1 + $0x4ec] ss:$16 sps:$4 sm:$0xff]   ;;  %v4408_v38 = vld [vmem:[%s6281_s1 + $0x4e0] ss:$16 sps:$4 sm:$0xff]  }
  0x63   :  { %1327 = vmatpush1.bf16.msra.mxu0 %v4316_v39  ;;  %1491 = vmatpush1.bf16.msra.mxu1 %v4319_v40  ;;  %v4411_v39 = vld [vmem:[%s6281_s1 + $0x4e8] ss:$16 sps:$4 sm:$0xff]   ;;  %v4416_v40 = vld [vmem:[%s6281_s1 + $0x504] ss:$16 sps:$4 sm:$0xff]  }
  0x64   :  { %1328 = vmatprep.subr.bf16.mxu0 %v4324_v41  ;;  %1492 = vmatprep.subr.bf16.mxu1 %v4327_v42  ;;  %v4419_v41 = vld [vmem:[%s6281_s1 + $0x50c] ss:$16 sps:$4 sm:$0xff]   ;;  %v4414_v42 = vld [vmem:[%s6281_s1 + $0x500] ss:$16 sps:$4 sm:$0xff]  }
  0x67   :  { %1329 = vmatpush1.bf16.msra.mxu0 %v4322_v43  ;;  %1493 = vmatpush1.bf16.msra.mxu1 %v4325_v44  ;;  %v4417_v43 = vld [vmem:[%s6281_s1 + $0x508] ss:$16 sps:$4 sm:$0xff]   ;;  %v4422_v44 = vld [vmem:[%s6281_s1 + $0x524] ss:$16 sps:$4 sm:$0xff]  }
  0x68   :  { %1330 = vmatprep.subr.bf16.mxu0 %v4330_v45  ;;  %1494 = vmatprep.subr.bf16.mxu1 %v4333_v46  ;;  %v4425_v45 = vld [vmem:[%s6281_s1 + $0x52c] ss:$16 sps:$4 sm:$0xff]   ;;  %v4420_v46 = vld [vmem:[%s6281_s1 + $0x520] ss:$16 sps:$4 sm:$0xff]  }
  0x6b   :  { %1331 = vmatpush1.bf16.msra.mxu0 %v4328_v47  ;;  %1495 = vmatpush1.bf16.msra.mxu1 %v4331_v48  ;;  %v4423_v47 = vld [vmem:[%s6281_s1 + $0x528] ss:$16 sps:$4 sm:$0xff]   ;;  %v4428_v48 = vld [vmem:[%s6281_s1 + $0x544] ss:$16 sps:$4 sm:$0xff]  }
  0x6c   :  { %1332 = vmatprep.subr.bf16.mxu0 %v4336_v49  ;;  %1496 = vmatprep.subr.bf16.mxu1 %v4339_v50  ;;  %v4431_v49 = vld [vmem:[%s6281_s1 + $0x54c] ss:$16 sps:$4 sm:$0xff]   ;;  %v4426_v50 = vld [vmem:[%s6281_s1 + $0x540] ss:$16 sps:$4 sm:$0xff]  }
  0x6f   :  { %1333 = vmatpush1.bf16.msra.mxu0 %v4334_v51  ;;  %1497 = vmatpush1.bf16.msra.mxu1 %v4337_v52  ;;  %v4429_v51 = vld [vmem:[%s6281_s1 + $0x548] ss:$16 sps:$4 sm:$0xff]   ;;  %v4434_v52 = vld [vmem:[%s6281_s1 + $0x564] ss:$16 sps:$4 sm:$0xff]  }
  0x70   :  { %1334 = vmatprep.subr.bf16.mxu0 %v4342_v53  ;;  %1498 = vmatprep.subr.bf16.mxu1 %v4345_v54  ;;  %v4437_v53 = vld [vmem:[%s6281_s1 + $0x56c] ss:$16 sps:$4 sm:$0xff]   ;;  %v4432_v54 = vld [vmem:[%s6281_s1 + $0x560] ss:$16 sps:$4 sm:$0xff]  }
  0x73   :  { %1335 = vmatpush1.bf16.msra.mxu0 %v4340_v55  ;;  %1499 = vmatpush1.bf16.msra.mxu1 %v4343_v56  ;;  %v4435_v55 = vld [vmem:[%s6281_s1 + $0x568] ss:$16 sps:$4 sm:$0xff]   ;;  %v4440_v56 = vld [vmem:[%s6281_s1 + $0x584] ss:$16 sps:$4 sm:$0xff]  }
  0x74   :  { %1336 = vmatprep.subr.bf16.mxu0 %v4348_v57  ;;  %1500 = vmatprep.subr.bf16.mxu1 %v4351_v58  ;;  %v4443_v57 = vld [vmem:[%s6281_s1 + $0x58c] ss:$16 sps:$4 sm:$0xff]   ;;  %v4438_v58 = vld [vmem:[%s6281_s1 + $0x580] ss:$16 sps:$4 sm:$0xff]  }
  0x77   :  { %1337 = vmatpush1.bf16.msra.mxu0 %v4346_v59  ;;  %1501 = vmatpush1.bf16.msra.mxu1 %v4349_v60  ;;  %v4441_v59 = vld [vmem:[%s6281_s1 + $0x588] ss:$16 sps:$4 sm:$0xff]   ;;  %v4446_v60 = vld [vmem:[%s6281_s1 + $0x5a4] ss:$16 sps:$4 sm:$0xff]  }
  0x78   :  { %1338 = vmatprep.subr.bf16.mxu0 %v4354_v61  ;;  %1502 = vmatprep.subr.bf16.mxu1 %v4357_v62  ;;  %v4449_v61 = vld [vmem:[%s6281_s1 + $0x5ac] ss:$16 sps:$4 sm:$0xff]   ;;  %v4444_v62 = vld [vmem:[%s6281_s1 + $0x5a0] ss:$16 sps:$4 sm:$0xff]  }
  0x7b   :  { %1339 = vmatpush1.bf16.msra.mxu0 %v4352_v63  ;;  %1503 = vmatpush1.bf16.msra.mxu1 %v4355_v0  ;;  %v4447_v63 = vld [vmem:[%s6281_s1 + $0x5a8] ss:$16 sps:$4 sm:$0xff]   ;;  %v4452_v0 = vld [vmem:[%s6281_s1 + $0x5c4] ss:$16 sps:$4 sm:$0xff]  }
  0x7c   :  { %1340 = vmatprep.subr.bf16.mxu0 %v4360_v1  ;;  %1504 = vmatprep.subr.bf16.mxu1 %v4363_v2  ;;  %v4455_v1 = vld [vmem:[%s6281_s1 + $0x5cc] ss:$16 sps:$4 sm:$0xff]   ;;  %v4450_v2 = vld [vmem:[%s6281_s1 + $0x5c0] ss:$16 sps:$4 sm:$0xff]  }
  0x7f   :  { %1341 = vmatpush1.bf16.msra.mxu0 %v4358_v3  ;;  %1505 = vmatpush1.bf16.msra.mxu1 %v4361_v4  ;;  %v4453_v3 = vld [vmem:[%s6281_s1 + $0x5c8] ss:$16 sps:$4 sm:$0xff]   ;;  %v4458_v4 = vld [vmem:[%s6281_s1 + $0x5e4] ss:$16 sps:$4 sm:$0xff]  }
  0x80   :  { %1351 = vmatprep.subr.bf16.mxu0 %v4368_v5  ;;  %1515 = vmatprep.subr.bf16.mxu1 %v4371_v6  ;;  %v4461_v5 = vld [vmem:[%s6281_s1 + $0x5ec] ss:$16 sps:$4 sm:$0xff]   ;;  %v4456_v6 = vld [vmem:[%s6281_s1 + $0x5e0] ss:$16 sps:$4 sm:$0xff]  }
  0x82   :  { %1343 = vmatmul.mubr.bf16.vlgmr.msra.gmra.mrb[0].mxu0 %v3650_v7  ;;  %1507 = vmatmul.mubr.bf16.vlgmr.msra.gmra.mrb[0].mxu1 %v3650_v7  ;;  %v4459_v7 = vld [vmem:[%s6281_s1 + $0x5e8] ss:$16 sps:$4 sm:$0xff]  }
  0x83   :  { %1352 = vmatpush1.bf16.msra.mxu0 %v4366_v8  ;;  %1516 = vmatpush1.bf16.msra.mxu1 %v4369_v9  ;;  %v4466_v8 = vld [vmem:[%s6281_s1 + $0x604] ss:$16 sps:$4 sm:$0xff]   ;;  %v4469_v9 = vld [vmem:[%s6281_s1 + $0x60c] ss:$16 sps:$4 sm:$0xff]  }
  0x84   :  { %1353 = vmatprep.subr.bf16.mxu0 %v4374_v10  ;;  %1517 = vmatprep.subr.bf16.mxu1 %v4377_v12  ;;  %v4464_v10 = vld [vmem:[%s6281_s1 + $0x600] ss:$16 sps:$4 sm:$0xff]   ;;  %v4467_v12 = vld [vmem:[%s6281_s1 + $0x608] ss:$16 sps:$4 sm:$0xff]  }
  0x85   :  { %1383 = vmatprep.mubr.bf16.mxu0 %v3653_v13  ;;  %1547 = vmatprep.mubr.bf16.mxu1 %v3653_v13  ;;  %v3652_v13 = vcombine.low %v5301_v11, %v5301_v11  ;;  %v4470_v11 = vld [vmem:[%s6280_s0 + $0x18] ss:$0 sps:$4 sm:$0xff]  }
  0x87   :  { %1354 = vmatpush1.bf16.msra.mxu0 %v4372_v14  ;;  %1518 = vmatpush1.bf16.msra.mxu1 %v4375_v15  ;;  %v4472_v14 = vld [vmem:[%s6283_s3 + $0x40] sm:$0xff]   ;;  %v4824_v15 = vmov 0  }
  0x88   :  { %1355 = vmatprep.subr.bf16.mxu0 %v4380_v16  ;;  %1519 = vmatprep.subr.bf16.mxu1 %v4383_v17  ;;  %v4471_v16 = vld [vmem:[%s6283_s3 + $0x80] sm:$0xff]  }
  0x89   :  { %v4473_v17 = vld [vmem:[%s6283_s3] sm:$0xff]  }
  0x8b   :  { %1356 = vmatpush1.bf16.msra.mxu0 %v4378_v18  ;;  %1520 = vmatpush1.bf16.msra.mxu1 %v4381_v19  ;;  %v4475_v18 = vld [vmem:[%s6283_s3 + $0x48] sm:$0xff]  }
  0x8c   :  { %1357 = vmatprep.subr.bf16.mxu0 %v4386_v20  ;;  %1521 = vmatprep.subr.bf16.mxu1 %v4389_v21  ;;  %v4474_v19 = vld [vmem:[%s6283_s3 + $0x88] sm:$0xff]   ;;  %v4478_v21 = vld [vmem:[%s6283_s3 + $0x50] sm:$0xff]  }
  0x8d   :  { %v4476_v20 = vld [vmem:[%s6283_s3 + $0x8] sm:$0xff]  }
  0x8f   :  { %1358 = vmatpush1.bf16.msra.mxu0 %v4384_v22  ;;  %1522 = vmatpush1.bf16.msra.mxu1 %v4387_v23  ;;  %v4477_v22 = vld [vmem:[%s6283_s3 + $0x90] sm:$0xff]  }
  0x90   :  { %1359 = vmatprep.subr.bf16.mxu0 %v4392_v24  ;;  %1523 = vmatprep.subr.bf16.mxu1 %v4395_v25  ;;  %v4479_v23 = vld [vmem:[%s6283_s3 + $0x10] sm:$0xff]   ;;  %v4481_v24 = vld [vmem:[%s6283_s3 + $0x58] sm:$0xff]  }
  0x91   :  { %v4480_v25 = vld [vmem:[%s6283_s3 + $0x98] sm:$0xff]  }
  0x93   :  { %1360 = vmatpush1.bf16.msra.mxu0 %v4390_v26  ;;  %1524 = vmatpush1.bf16.msra.mxu1 %v4393_v27  ;;  %v4482_v26 = vld [vmem:[%s6283_s3 + $0x18] sm:$0xff]   ;;  %v4484_v27 = vld [vmem:[%s6283_s3 + $0x60] sm:$0xff]  }
  0x94   :  { %1361 = vmatprep.subr.bf16.mxu0 %v4398_v28  ;;  %1525 = vmatprep.subr.bf16.mxu1 %v4401_v29  ;;  %v4483_v28 = vld [vmem:[%s6283_s3 + $0xa0] sm:$0xff]  }
  0x95   :  { %v4485_v29 = vld [vmem:[%s6283_s3 + $0x20] sm:$0xff]  }
  0x97   :  { %1362 = vmatpush1.bf16.msra.mxu0 %v4396_v30  ;;  %1526 = vmatpush1.bf16.msra.mxu1 %v4399_v31  ;;  %v4487_v30 = vld [vmem:[%s6283_s3 + $0x68] sm:$0xff]  }
  0x98   :  { %1363 = vmatprep.subr.bf16.mxu0 %v4404_v32  ;;  %1527 = vmatprep.subr.bf16.mxu1 %v4407_v33  ;;  %v4486_v31 = vld [vmem:[%s6283_s3 + $0xa8] sm:$0xff]  }
  0x99   :  { %v4488_v32 = vld [vmem:[%s6283_s3 + $0x28] sm:$0xff]  }
  0x9b   :  { %1364 = vmatpush1.bf16.msra.mxu0 %v4402_v34  ;;  %1528 = vmatpush1.bf16.msra.mxu1 %v4405_v35 }
  0x9c   :  { %1365 = vmatprep.subr.bf16.mxu0 %v4410_v36  ;;  %1529 = vmatprep.subr.bf16.mxu1 %v4413_v37 }
  0x9f   :  { %1366 = vmatpush1.bf16.msra.mxu0 %v4408_v38  ;;  %1530 = vmatpush1.bf16.msra.mxu1 %v4411_v39 }
  0xa0   :  { %1367 = vmatprep.subr.bf16.mxu0 %v4416_v40  ;;  %1531 = vmatprep.subr.bf16.mxu1 %v4419_v41 }
  0xa3   :  { %1368 = vmatpush1.bf16.msra.mxu0 %v4414_v42  ;;  %1532 = vmatpush1.bf16.msra.mxu1 %v4417_v43 }
  0xa4   :  { %1369 = vmatprep.subr.bf16.mxu0 %v4422_v44  ;;  %1533 = vmatprep.subr.bf16.mxu1 %v4425_v45 }
  0xa7   :  { %1370 = vmatpush1.bf16.msra.mxu0 %v4420_v46  ;;  %1534 = vmatpush1.bf16.msra.mxu1 %v4423_v47 }
  0xa8   :  { %1371 = vmatprep.subr.bf16.mxu0 %v4428_v48  ;;  %1535 = vmatprep.subr.bf16.mxu1 %v4431_v49 }
  0xab   :  { %1372 = vmatpush1.bf16.msra.mxu0 %v4426_v50  ;;  %1536 = vmatpush1.bf16.msra.mxu1 %v4429_v51 }
  0xac   :  { %1373 = vmatprep.subr.bf16.mxu0 %v4434_v52  ;;  %1537 = vmatprep.subr.bf16.mxu1 %v4437_v53 }
  0xaf   :  { %1374 = vmatpush1.bf16.msra.mxu0 %v4432_v54  ;;  %1538 = vmatpush1.bf16.msra.mxu1 %v4435_v55 }
  0xb0   :  { %1375 = vmatprep.subr.bf16.mxu0 %v4440_v56  ;;  %1539 = vmatprep.subr.bf16.mxu1 %v4443_v57 }
  0xb3   :  { %1376 = vmatpush1.bf16.msra.mxu0 %v4438_v58  ;;  %1540 = vmatpush1.bf16.msra.mxu1 %v4441_v59 }
  0xb4   :  { %1377 = vmatprep.subr.bf16.mxu0 %v4446_v60  ;;  %1541 = vmatprep.subr.bf16.mxu1 %v4449_v61 }
  0xb7   :  { %1378 = vmatpush1.bf16.msra.mxu0 %v4444_v62  ;;  %1542 = vmatpush1.bf16.msra.mxu1 %v4447_v63 }
  0xb8   :  { %1379 = vmatprep.subr.bf16.mxu0 %v4452_v0  ;;  %1543 = vmatprep.subr.bf16.mxu1 %v4455_v1 }
  0xbb   :  { %1380 = vmatpush1.bf16.msra.mxu0 %v4450_v2  ;;  %1544 = vmatpush1.bf16.msra.mxu1 %v4453_v3 }
  0xbc   :  { %1381 = vmatprep.subr.bf16.mxu0 %v4458_v4  ;;  %1545 = vmatprep.subr.bf16.mxu1 %v4461_v5 }
  0xbf   :  { %1382 = vmatpush1.bf16.msra.mxu0 %v4456_v6  ;;  %1546 = vmatpush1.bf16.msra.mxu1 %v4459_v7 }
  0xc0   :  { %1392 = vmatprep.subr.bf16.mxu0 %v4466_v8  ;;  %1556 = vmatprep.subr.bf16.mxu1 %v4469_v9 }
  0xc2   :  { %1384 = vmatmul.mubr.bf16.vlgmr.msra.gmra.mrb[0].mxu0 %v3652_v13  ;;  %1548 = vmatmul.mubr.bf16.vlgmr.msra.gmra.mrb[0].mxu1 %v3652_v13 }
  0xc3   :  { %1393 = vmatpush1.bf16.msra.mxu0 %v4464_v10  ;;  %1557 = vmatpush1.bf16.msra.mxu1 %v4467_v12 }
  0xc4   :  { %1424 = vmatprep.mubr.bf16.mxu0 %v4824_v15  ;;  %1588 = vmatprep.mubr.bf16.mxu1 %v4824_v15 }
  0xc5   :  { %1855 = vmatprep.subr.bf16.mxu1 %v4824_v15  ;;  %4077 = vmatprep.subr.bf16.mxu0 %v4472_v14 }
  0xce   :  { %3851 = vmatmul.mubr.msk.bf16.vlgmr.msra.gmra.mrb[0].mxu0 %vm1265_vm0, %v4470_v11  ;;  %3852 = vmatmul.mubr.msk.bf16.vlgmr.msra.gmra.mrb[0].mxu1 %vm1265_vm0, %v4470_v11 }
  0xcf   :  { %1856 = vmatpush1.bf16.msra.mxu1 %v4471_v16  ;;  %4078 = vmatpush3.bf16.msra.mxu0 %v4473_v17 }
  0xd0   :  { %1857 = vmatprep.subr.bf16.mxu1 %v4824_v15  ;;  %4079 = vmatprep.subr.bf16.mxu0 %v4475_v18 }
  0xd3   :  { %1858 = vmatpush1.bf16.msra.mxu1 %v4474_v19  ;;  %4080 = vmatpush3.bf16.msra.mxu0 %v4476_v20 }
  0xd4   :  { %1859 = vmatprep.subr.bf16.mxu1 %v4824_v15  ;;  %4081 = vmatprep.subr.bf16.mxu0 %v4478_v21 }
  0xd7   :  { %1860 = vmatpush1.bf16.msra.mxu1 %v4477_v22  ;;  %4082 = vmatpush3.bf16.msra.mxu0 %v4479_v23 }
  0xd8   :  { %1861 = vmatprep.subr.bf16.mxu1 %v4824_v15  ;;  %4083 = vmatprep.subr.bf16.mxu0 %v4481_v24 }
  0xdb   :  { %1862 = vmatpush1.bf16.msra.mxu1 %v4480_v25  ;;  %4084 = vmatpush3.bf16.msra.mxu0 %v4482_v26 }
  0xdc   :  { %1863 = vmatprep.subr.bf16.mxu1 %v4824_v15  ;;  %4085 = vmatprep.subr.bf16.mxu0 %v4484_v27 }
  0xdf   :  { %1864 = vmatpush1.bf16.msra.mxu1 %v4483_v28  ;;  %4086 = vmatpush3.bf16.msra.mxu0 %v4485_v29 }
  0xe0   :  { %1865 = vmatprep.subr.bf16.mxu1 %v4824_v15  ;;  %4087 = vmatprep.subr.bf16.mxu0 %v4487_v30 }
  0xe1   :  { %17 = vsyncpa [#allocation3], 0  ;;  %v4489_v33 = vld [vmem:[%s6283_s3 + $0xb0] sm:$0xff]   ;;  %v4492_v36 = vld [vmem:[%s6283_s3 + $0xb8] sm:$0xff]   ;;  %s4825_s27 = smov 64   ;;  %v241_v41 = vlaneseq  ;;  %vm2031_vm1 = vcmask 523264  }
  0xe2   :  { %v4490_v34 = vld [vmem:[%s6283_s3 + $0x70] sm:$0xff]   ;;  %v4493_v37 = vld [vmem:[%s6283_s3 + $0x78] sm:$0xff]   ;;  %v4495_v39 = vld [vmem:[%s6283_s3 + $0xc0] sm:$0xff]  }
  0xe3   :  { %1866 = vmatpush1.bf16.msra.mxu1 %v4486_v31  ;;  %4088 = vmatpush3.bf16.msra.mxu0 %v4488_v32  ;;  %v4491_v35 = vld [vmem:[%s6283_s3 + $0x30] sm:$0xff]   ;;  %v4494_v38 = vld [vmem:[%s6283_s3 + $0x38] sm:$0xff]   ;;  %v1898_v40 = vld [vmem:[%s6289_s9] sm:$0xff]  ;;  %v5591_v42 = vshrl.u32 %v241_v41, 7 }
  0xe4   :  { %1867 = vmatprep.subr.bf16.mxu1 %v4824_v15  ;;  %4089 = vmatprep.subr.bf16.mxu0 %v4490_v34  ;;  %v239_v45 = vld [vmem:[%s6282_s2] sm:$0xf]  ;;  %v4498_v9 = vld [vmem:[%s6285_s5 + $0x4] ss:$16 sps:$4 sm:$0xff]   ;;  %v4510_v29 = vld [vmem:[%s6285_s5 + $0xc] ss:$16 sps:$4 sm:$0xff]  }
  0xe5   :  { %1900 = vrot.lane.b32.xlu0 %v1898_v40, %s4825_s27  ;;  %v5594_v43 = vsub.s32 0, %v5591_v42  ;;  %v5597_v44 = vsub.s32 2, %v5591_v42  ;;  %v5603_v46 = vsub.s32 1, %v5591_v42  ;;  %v5606_v47 = vsub.s32 3, %v5591_v42  ;;  %v4496_v8 = vld [vmem:[%s6285_s5] ss:$16 sps:$4 sm:$0xff]  }
  0xe6   :  { %v4501_v13 = vld [vmem:[%s6285_s5 + $0x24] ss:$16 sps:$4 sm:$0xff]   ;;  %v3853_v14 = vld [vmem:[%s6284_s4] ss:$0 sm:$0xff]  ;;  %v4528_v40 = vld [vmem:[%s6287_s7 + $0x3c] ss:$28 sps:$4 sm:$0xff]  }
  0xe7   :  { %1868 = vmatpush1.bf16.msra.mxu1 %v4489_v33  ;;  %4090 = vmatpush3.bf16.msra.mxu0 %v4491_v35  ;;  %v244_v48 = vrot.slane %v239_v45, %v5594_v43  ;;  %v252_v49 = vrot.slane %v239_v45, %v5597_v44  ;;  %v248_v50 = vrot.slane %v239_v45, %v5603_v46  ;;  %v4499_v20 = vld [vmem:[%s6285_s5 + $0x20] ss:$16 sps:$4 sm:$0xff]   ;;  %v4504_v23 = vld [vmem:[%s6285_s5 + $0x44] ss:$16 sps:$4 sm:$0xff]  }
  0xe8   :  { %1869 = vmatprep.subr.bf16.mxu1 %v4824_v15  ;;  %4091 = vmatprep.subr.bf16.mxu0 %v4493_v37  ;;  %v256_v51 = vrot.slane %v239_v45, %v5606_v47  ;;  %v4502_v26 = vld [vmem:[%s6285_s5 + $0x40] ss:$16 sps:$4 sm:$0xff]   ;;  %v4507_v27 = vld [vmem:[%s6285_s5 + $0x64] ss:$16 sps:$4 sm:$0xff]  }
  0xe9   :  { %v4505_v28 = vld [vmem:[%s6285_s5 + $0x60] ss:$16 sps:$4 sm:$0xff]   ;;  %v4526_v41 = vld [vmem:[%s6287_s7 + $0x38] ss:$28 sps:$4 sm:$0xff]  }
  0xea   :  { %v4534_v45 = vld [vmem:[%s6287_s7 + $0x74] ss:$28 sps:$4 sm:$0xff]  }
  0xeb   :  { %1870 = vmatpush1.bf16.msra.mxu1 %v4492_v36  ;;  %4092 = vmatpush3.bf16.msra.mxu0 %v4494_v38  ;;  %v4520_v38 = vld [vmem:[%s6287_s7] ss:$28 sps:$4 sm:$0xff]  }
  0xec   :  { %1871 = vmatprep.subr.bf16.mxu1 %v4824_v15 }
  0xef   :  { %1872 = vmatpush1.bf16.msra.mxu1 %v4495_v39  ;;  %v4522_v39 = vld [vmem:[%s6287_s7 + $0x4] ss:$28 sps:$4 sm:$0xff]  }
  0xf0   :  { %2035 = vmatprep.subr.bf16.mxu1 %v4498_v9  ;;  %3261 = vmatprep.subr.bf16.mxu0 %v4522_v39  ;;  %v4508_v9 = vld [vmem:[%s6285_s5 + $0x8] ss:$16 sps:$4 sm:$0xff]  }
  0xf1   :  { %v4583_v39 = vld [vmem:[%s6287_s7 + $0x238] ss:$28 sps:$4 sm:$0xff]  }
 0x157   :  { %v1901_v33 = vpop.permute.xlu0 %1900 }
 0x1a1   :  { %v1426_v52 = vpop.f32.mrb[0].mxu0  ;;  %v1590_v53 = vpop.f32.mrb[0].mxu1 }
 0x1a2   :  { %v4121_v54 = vadd.f32 %v1426_v52, %v244_v48  ;;  %v4123_v55 = vadd.f32 %v1590_v53, %v252_v49  ;;  %v1428_v56 = vpop.f32.mrb[1].mxu0  ;;  %v1592_v57 = vpop.f32.mrb[1].mxu1  ;;  %v4532_v48 = vld [vmem:[%s6287_s7 + $0x70] ss:$28 sps:$4 sm:$0xff]   ;;  %v4544_v52 = vld [vmem:[%s6287_s7 + $0xe0] ss:$28 sps:$4 sm:$0xff]  }
 0x1a3   :  { %v4122_v58 = vadd.f32 %v1428_v56, %v248_v50  ;;  %v4124_v59 = vadd.f32 %v1592_v57, %v256_v51  ;;  %v1430_v60 = vpop.f32.mrb[2].mxu0  ;;  %v1594_v61 = vpop.f32.mrb[2].mxu1  ;;  %v4540_v49 = vld [vmem:[%s6287_s7 + $0xac] ss:$28 sps:$4 sm:$0xff]   ;;  %v4546_v51 = vld [vmem:[%s6287_s7 + $0xe4] ss:$28 sps:$4 sm:$0xff]  }
 0x1a4   :  { %v1597_v62 = vmax.f32 %v4121_v54, 0.0  ;;  %v1599_v63 = vmax.f32 %v4123_v55, 0.0  ;;  %v1431_v0 = vpop.f32.mrb[3].mxu0  ;;  %v1595_v1 = vpop.f32.mrb[3].mxu1  ;;  %v4538_v50 = vld [vmem:[%s6287_s7 + $0xa8] ss:$28 sps:$4 sm:$0xff]  }
 0x1a5   :  { %v1598_v2 = vmax.f32 %v4122_v58, 0.0  ;;  %v1600_v3 = vmax.f32 %v4124_v59, 0.0  ;;  %v4552_v53 = vld [vmem:[%s6287_s7 + $0x11c] ss:$28 sps:$4 sm:$0xff]   ;;  %v4558_v55 = vld [vmem:[%s6287_s7 + $0x154] ss:$28 sps:$4 sm:$0xff]  }
 0x1a6   :  { %v1601_v6 = vpack.c.bf16 %v1597_v62, %v1597_v62  ;;  %v1603_v7 = vpack.c.bf16 %v1599_v63, %v1599_v63  ;;  %v4550_v54 = vld [vmem:[%s6287_s7 + $0x118] ss:$28 sps:$4 sm:$0xff]   ;;  %v4556_v56 = vld [vmem:[%s6287_s7 + $0x150] ss:$28 sps:$4 sm:$0xff]   ;;  %v4562_v58 = vld [vmem:[%s6287_s7 + $0x188] ss:$28 sps:$4 sm:$0xff]  }
 0x1a7   :  { %v1602_v4 = vpack.c.bf16 %v1598_v2, %v1598_v2  ;;  %v1604_v5 = vpack.c.bf16 %v1600_v3, %v1600_v3  ;;  %v4564_v57 = vld [vmem:[%s6287_s7 + $0x18c] ss:$28 sps:$4 sm:$0xff]   ;;  %v4570_v59 = vld [vmem:[%s6287_s7 + $0x1c4] ss:$28 sps:$4 sm:$0xff]   ;;  %v4576_v61 = vld [vmem:[%s6287_s7 + $0x1fc] ss:$28 sps:$4 sm:$0xff]  }
 0x1a8   :  { %v4568_v60 = vld [vmem:[%s6287_s7 + $0x1c0] ss:$28 sps:$4 sm:$0xff]   ;;  %v4574_v62 = vld [vmem:[%s6287_s7 + $0x1f8] ss:$28 sps:$4 sm:$0xff]   ;;  %v4580_v0 = vld [vmem:[%s6287_s7 + $0x230] ss:$28 sps:$4 sm:$0xff]  }
 0x1a9   :  { %1847 = vmatprep.mubr.bf16.mxu0 %v1602_v4  ;;  %3879 = vmatprep.mubr.msk.bf16.mxu1 %vm1265_vm0, %v1604_v5  ;;  %v4582_v63 = vld [vmem:[%s6287_s7 + $0x234] ss:$28 sps:$4 sm:$0xff]   ;;  %v4588_v1 = vld [vmem:[%s6287_s7 + $0x26c] ss:$28 sps:$4 sm:$0xff]   ;;  %v4594_v3 = vld [vmem:[%s6287_s7 + $0x2a4] ss:$28 sps:$4 sm:$0xff]  }
 0x1aa   :  { %1848 = vmatmul.mubr.bf16.vlgmr.msra.gmra.mrb[4].mxu0 %v1601_v6  ;;  %1888 = vmatmul.mubr.bf16.vlgmr.msra.gmra.mrb[4].mxu1 %v1603_v7  ;;  %v4586_v2 = vld [vmem:[%s6287_s7 + $0x268] ss:$28 sps:$4 sm:$0xff]   ;;  %v4592_v4 = vld [vmem:[%s6287_s7 + $0x2a0] ss:$28 sps:$4 sm:$0xff]   ;;  %v4598_v6 = vld [vmem:[%s6287_s7 + $0x2d8] ss:$28 sps:$4 sm:$0xff]  }
 0x1ab   :  { %2067 = vmatprep.mubr.bf16.mxu1 %v4824_v15  ;;  %2036 = vmatpush1.bf16.msra.mxu1 %v4496_v8  ;;  %v4600_v5 = vld [vmem:[%s6287_s7 + $0x2dc] ss:$28 sps:$4 sm:$0xff]   ;;  %v4606_v7 = vld [vmem:[%s6287_s7 + $0x314] ss:$28 sps:$4 sm:$0xff]  }
 0x1ac   :  { %2037 = vmatprep.subr.bf16.mxu1 %v4501_v13  ;;  %3262 = vmatpush1.bf16.msra.mxu0 %v4520_v38  ;;  %v4604_v8 = vld [vmem:[%s6287_s7 + $0x310] ss:$28 sps:$4 sm:$0xff]   ;;  %v4511_v13 = vld [vmem:[%s6285_s5 + $0x28] ss:$16 sps:$4 sm:$0xff]  }
 0x1ad   :  { %3263 = vmatprep.subr.bf16.mxu0 %v4528_v40  ;;  %v4585_v38 = vld [vmem:[%s6287_s7 + $0x23c] ss:$28 sps:$4 sm:$0xff]   ;;  %v4591_v40 = vld [vmem:[%s6287_s7 + $0x274] ss:$28 sps:$4 sm:$0xff]  }
 0x1af   :  { %2038 = vmatpush1.bf16.msra.mxu1 %v4499_v20  ;;  %v4531_v20 = vld [vmem:[%s6287_s7 + $0x44] ss:$28 sps:$4 sm:$0xff]  }
 0x1b0   :  { %2039 = vmatprep.subr.bf16.mxu1 %v4504_v23  ;;  %3264 = vmatpush1.bf16.msra.mxu0 %v4526_v41  ;;  %v4535_v23 = vld [vmem:[%s6287_s7 + $0x78] ss:$28 sps:$4 sm:$0xff]   ;;  %v4589_v41 = vld [vmem:[%s6287_s7 + $0x270] ss:$28 sps:$4 sm:$0xff]  }
 0x1b1   :  { %3265 = vmatprep.subr.bf16.mxu0 %v4534_v45  ;;  %v4597_v45 = vld [vmem:[%s6287_s7 + $0x2ac] ss:$28 sps:$4 sm:$0xff]  }
 0x1b3   :  { %2040 = vmatpush1.bf16.msra.mxu1 %v4502_v26  ;;  %v4549_v26 = vld [vmem:[%s6287_s7 + $0xec] ss:$28 sps:$4 sm:$0xff]  }
 0x1b4   :  { %2041 = vmatprep.subr.bf16.mxu1 %v4507_v27  ;;  %3266 = vmatpush1.bf16.msra.mxu0 %v4532_v48  ;;  %v4547_v27 = vld [vmem:[%s6287_s7 + $0xe8] ss:$28 sps:$4 sm:$0xff]  }
 0x1b5   :  { %3267 = vmatprep.subr.bf16.mxu0 %v4540_v49  ;;  %v4595_v48 = vld [vmem:[%s6287_s7 + $0x2a8] ss:$28 sps:$4 sm:$0xff]  }
 0x1b6   :  { %v4603_v49 = vld [vmem:[%s6287_s7 + $0x2e4] ss:$28 sps:$4 sm:$0xff]  }
 0x1b7   :  { %2042 = vmatpush1.bf16.msra.mxu1 %v4505_v28  ;;  %v4555_v28 = vld [vmem:[%s6287_s7 + $0x124] ss:$28 sps:$4 sm:$0xff]  }
 0x1b8   :  { %2076 = vmatprep.subr.bf16.mxu1 %v4510_v29  ;;  %3268 = vmatpush1.bf16.msra.mxu0 %v4538_v50  ;;  %v4553_v29 = vld [vmem:[%s6287_s7 + $0x120] ss:$28 sps:$4 sm:$0xff]  }
 0x1b9   :  { %3269 = vmatprep.subr.bf16.mxu0 %v4546_v51  ;;  %v4601_v50 = vld [vmem:[%s6287_s7 + $0x2e0] ss:$28 sps:$4 sm:$0xff]  }
 0x1ba   :  { %v4609_v51 = vld [vmem:[%s6287_s7 + $0x31c] ss:$28 sps:$4 sm:$0xff]  }
 0x1bc   :  { %3270 = vmatpush1.bf16.msra.mxu0 %v4544_v52  ;;  %v4607_v52 = vld [vmem:[%s6287_s7 + $0x318] ss:$28 sps:$4 sm:$0xff]  }
 0x1bd   :  { %3271 = vmatprep.subr.bf16.mxu0 %v4552_v53  ;;  %v4612_v53 = vld [vmem:[%s6287_s7 + $0x34c] ss:$28 sps:$4 sm:$0xff]  }
 0x1c0   :  { %3272 = vmatpush1.bf16.msra.mxu0 %v4550_v54  ;;  %v4615_v54 = vld [vmem:[%s6287_s7 + $0x354] ss:$28 sps:$4 sm:$0xff]  }
 0x1c1   :  { %3273 = vmatprep.subr.bf16.mxu0 %v4558_v55  ;;  %v4610_v55 = vld [vmem:[%s6287_s7 + $0x348] ss:$28 sps:$4 sm:$0xff]  }
 0x1c4   :  { %3274 = vmatpush1.bf16.msra.mxu0 %v4556_v56  ;;  %v4613_v56 = vld [vmem:[%s6287_s7 + $0x350] ss:$28 sps:$4 sm:$0xff]  }
 0x1c5   :  { %3275 = vmatprep.subr.bf16.mxu0 %v4564_v57  ;;  %v4618_v57 = vld [vmem:[%s6287_s7 + $0x384] ss:$28 sps:$4 sm:$0xff]  }
 0x1c8   :  { %3276 = vmatpush1.bf16.msra.mxu0 %v4562_v58  ;;  %v4621_v58 = vld [vmem:[%s6287_s7 + $0x38c] ss:$28 sps:$4 sm:$0xff]  }
 0x1c9   :  { %3277 = vmatprep.subr.bf16.mxu0 %v4570_v59  ;;  %v5874_v59 = vld [vmem:[%s6286_s6] sm:$0xf] }
 0x1cc   :  { %3278 = vmatpush1.bf16.msra.mxu0 %v4568_v60  ;;  %v1931_v60 = vrot.slane %v5874_v59, %v5594_v43 }
 0x1cd   :  { %3279 = vmatprep.subr.bf16.mxu0 %v4576_v61  ;;  %v1935_v61 = vrot.slane %v5874_v59, %v5603_v46 }
 0x1d0   :  { %3280 = vmatpush1.bf16.msra.mxu0 %v4574_v62 }
 0x1d1   :  { %3281 = vmatprep.subr.bf16.mxu0 %v4582_v63 }
 0x1d4   :  { %3282 = vmatpush1.bf16.msra.mxu0 %v4580_v0 }
 0x1d5   :  { %3283 = vmatprep.subr.bf16.mxu0 %v4588_v1 }
 0x1d8   :  { %3284 = vmatpush1.bf16.msra.mxu0 %v4586_v2 }
 0x1d9   :  { %3285 = vmatprep.subr.bf16.mxu0 %v4594_v3 }
 0x1dc   :  { %3286 = vmatpush1.bf16.msra.mxu0 %v4592_v4 }
 0x1dd   :  { %3287 = vmatprep.subr.bf16.mxu0 %v4600_v5  ;;  %v4616_v5 = vld [vmem:[%s6287_s7 + $0x380] ss:$28 sps:$4 sm:$0xff]  }
 0x1e0   :  { %3288 = vmatpush1.bf16.msra.mxu0 %v4598_v6  ;;  %v4619_v6 = vld [vmem:[%s6287_s7 + $0x388] ss:$28 sps:$4 sm:$0xff]  }
 0x1e1   :  { %3289 = vmatprep.subr.bf16.mxu0 %v4606_v7 }
 0x1e4   :  { %3290 = vmatpush1.bf16.msra.mxu0 %v4604_v8  ;;  %v4624_v8 = vld [vmem:[%s6287_s7 + $0x3bc] ss:$28 sps:$4 sm:$0xff]  }
 0x1e5   :  { %3291 = vmatprep.subr.bf16.mxu0 %v4612_v53  ;;  %v4667_v53 = vld [vmem:[%s6287_s7 + $0x548] ss:$28 sps:$4 sm:$0xff]  }
 0x1e8   :  { %3292 = vmatpush1.bf16.msra.mxu0 %v4610_v55  ;;  %v4672_v55 = vld [vmem:[%s6287_s7 + $0x14] ss:$28 sps:$4 sm:$0xff]  }
 0x1e9   :  { %3302 = vmatprep.subr.bf16.mxu0 %v4618_v57  ;;  %v4670_v57 = vld [vmem:[%s6287_s7 + $0x10] ss:$28 sps:$4 sm:$0xff]  }
 0x27d   :  { %v4093_v10 = vpop.f32.mrb[4].mxu0  ;;  %v1889_v12 = vpop.f32.mrb[4].mxu1 }
 0x27e   :  { %v4094_v11 = vpop.f32.mrb[5].mxu0  ;;  %v1891_v16 = vpop.f32.mrb[5].mxu1 }
 0x27f   :  { %v4095_v17 = vadd.f32 %v4094_v11, %v4093_v10  ;;  %v4096_v18 = vpop.f32.mrb[6].mxu0  ;;  %v1892_v19 = vpop.f32.mrb[6].mxu1  ;;  %v4513_v10 = vld [vmem:[%s6285_s5 + $0x2c] ss:$16 sps:$4 sm:$0xff]   ;;  %v4514_v11 = vld [vmem:[%s6285_s5 + $0x48] ss:$16 sps:$4 sm:$0xff]  }
 0x280   :  { %v4097_v21 = vpop.f32.mrb[7].mxu0  ;;  %v1893_v22 = vpop.f32.mrb[7].mxu1  ;;  %v4519_v16 = vld [vmem:[%s6285_s5 + $0x6c] ss:$16 sps:$4 sm:$0xff]   ;;  %v4523_v19 = vld [vmem:[%s6287_s7 + $0x8] ss:$28 sps:$4 sm:$0xff]  }
 0x281   :  { %v1850_v24 = vadd.f32 %v4095_v17, %v3853_v14  ;;  %v4516_v14 = vld [vmem:[%s6285_s5 + $0x4c] ss:$16 sps:$4 sm:$0xff]   ;;  %v4517_v17 = vld [vmem:[%s6285_s5 + $0x68] ss:$16 sps:$4 sm:$0xff]  }
 0x282   :  { %v4525_v18 = vld [vmem:[%s6287_s7 + $0xc] ss:$28 sps:$4 sm:$0xff]   ;;  %v4529_v21 = vld [vmem:[%s6287_s7 + $0x40] ss:$28 sps:$4 sm:$0xff]  }
 0x283   :  { %v1890_v25 = vadd.f32 %v1889_v12, %v1850_v24  ;;  %v4537_v22 = vld [vmem:[%s6287_s7 + $0x7c] ss:$28 sps:$4 sm:$0xff]   ;;  %v4543_v24 = vld [vmem:[%s6287_s7 + $0xb4] ss:$28 sps:$4 sm:$0xff]  }
 0x285   :  { %1905 = vrot.lane.b32.xlu0 %v1890_v25, %s4825_s27  ;;  %3629 = vst [vmem:[%s6291_s11] sm:$0xff] %v1890_v25  ;;  %v1895_v30 = vmul.f32 0.5, %v1890_v25  ;;  %v4541_v25 = vld [vmem:[%s6287_s7 + $0xb0] ss:$28 sps:$4 sm:$0xff]  }
 0x287   :  { %v1896_v31 = vmul.f32 1.442695, %v1895_v30  ;;  %v4561_v30 = vld [vmem:[%s6287_s7 + $0x15c] ss:$28 sps:$4 sm:$0xff]  }
 0x289   :  { %4770 = vpow2.f32 %v1896_v31  ;;  %v4559_v31 = vld [vmem:[%s6287_s7 + $0x158] ss:$28 sps:$4 sm:$0xff]  }
 0x293   :  { %v4771_v32 = vpop.eup %4770 }
 0x294   :  { %v1903_v34 = vmul.f32 %v4771_v32, %v1901_v33  ;;  %v4567_v32 = vld [vmem:[%s6287_s7 + $0x194] ss:$28 sps:$4 sm:$0xff]  }
 0x295   :  { %v4565_v33 = vld [vmem:[%s6287_s7 + $0x190] ss:$28 sps:$4 sm:$0xff]  }
 0x2f7   :  { %v1906_v35 = vpop.permute.xlu0 %1905 }
 0x2f8   :  { %v1908_v36 = vadd.f32 %v1906_v35, %v1903_v34  ;;  %v4573_v34 = vld [vmem:[%s6287_s7 + $0x1cc] ss:$28 sps:$4 sm:$0xff]  }
 0x2f9   :  { %v4571_v35 = vld [vmem:[%s6287_s7 + $0x1c8] ss:$28 sps:$4 sm:$0xff]  }
 0x2fa   :  { %v1909_v37 = vpack.c.bf16 %v1908_v36, %v1908_v36  ;;  %v4579_v36 = vld [vmem:[%s6287_s7 + $0x204] ss:$28 sps:$4 sm:$0xff]  }
 0x2fc   :  { %1949 = vrot.lane.b32.xlu1 %v1909_v37, %s4825_s27  ;;  %v4577_v37 = vld [vmem:[%s6287_s7 + $0x200] ss:$28 sps:$4 sm:$0xff]  }
 0x36e   :  { %v1950_v12 = vpop.permute.xlu1 %1949 }
 0x36f   :  { %3896 = vmatmul.mubr.msk.bf16.vlgmr.msra.gmra.mrb[8].mxu1 %vm2031_vm1, %v1950_v12 }
 0x370   :  { %2077 = vmatpush1.bf16.msra.mxu1 %v4508_v9  ;;  %2108 = vmatprep.mubr.bf16.mxu1 %v4824_v15  ;;  %v4627_v9 = vld [vmem:[%s6287_s7 + $0x3c4] ss:$28 sps:$4 sm:$0xff]  }
 0x371   :  { %2078 = vmatprep.subr.bf16.mxu1 %v4513_v10  ;;  %v4622_v10 = vld [vmem:[%s6287_s7 + $0x3b8] ss:$28 sps:$4 sm:$0xff]  }
 0x374   :  { %2079 = vmatpush1.bf16.msra.mxu1 %v4511_v13  ;;  %v4630_v13 = vld [vmem:[%s6287_s7 + $0x3f4] ss:$28 sps:$4 sm:$0xff]  }
 0x375   :  { %2080 = vmatprep.subr.bf16.mxu1 %v4516_v14  ;;  %v4633_v14 = vld [vmem:[%s6287_s7 + $0x3fc] ss:$28 sps:$4 sm:$0xff]  }
 0x378   :  { %2081 = vmatpush1.bf16.msra.mxu1 %v4514_v11  ;;  %v4628_v11 = vld [vmem:[%s6287_s7 + $0x3f0] ss:$28 sps:$4 sm:$0xff]  }
 0x379   :  { %2082 = vmatprep.subr.bf16.mxu1 %v4519_v16  ;;  %v4631_v16 = vld [vmem:[%s6287_s7 + $0x3f8] ss:$28 sps:$4 sm:$0xff]  }
 0x37c   :  { %2083 = vmatpush1.bf16.msra.mxu1 %v4517_v17  ;;  %v4636_v17 = vld [vmem:[%s6287_s7 + $0x42c] ss:$28 sps:$4 sm:$0xff]  }
 0x37d   :  { %3343 = vmatprep.subr.bf16.mxu1 %v4525_v18  ;;  %v4639_v18 = vld [vmem:[%s6287_s7 + $0x434] ss:$28 sps:$4 sm:$0xff]  }
 0x37f   :  { %3897 = vmatmul.mubr.msk.bf16.vlgmr.msra.gmra.mrb[12].mxu1 %vm2031_vm1, %v1950_v12  ;;  %v4625_v12 = vld [vmem:[%s6287_s7 + $0x3c0] ss:$28 sps:$4 sm:$0xff]  }
 0x380   :  { %3344 = vmatpush1.bf16.msra.mxu1 %v4523_v19  ;;  %v1943_v19 = vrot.slane %v5874_v59, %v5606_v47 }
 0x381   :  { %3345 = vmatprep.subr.bf16.mxu1 %v4531_v20 }
 0x384   :  { %3346 = vmatpush1.bf16.msra.mxu1 %v4529_v21  ;;  %v4634_v21 = vld [vmem:[%s6287_s7 + $0x428] ss:$28 sps:$4 sm:$0xff]  }
 0x385   :  { %3347 = vmatprep.subr.bf16.mxu1 %v4537_v22  ;;  %v4637_v22 = vld [vmem:[%s6287_s7 + $0x430] ss:$28 sps:$4 sm:$0xff]  }
 0x388   :  { %3348 = vmatpush1.bf16.msra.mxu1 %v4535_v23 }
 0x389   :  { %3349 = vmatprep.subr.bf16.mxu1 %v4543_v24  ;;  %v4642_v24 = vld [vmem:[%s6287_s7 + $0x464] ss:$28 sps:$4 sm:$0xff]  }
 0x38c   :  { %3350 = vmatpush1.bf16.msra.mxu1 %v4541_v25  ;;  %v4645_v25 = vld [vmem:[%s6287_s7 + $0x46c] ss:$28 sps:$4 sm:$0xff]  }
 0x38d   :  { %3351 = vmatprep.subr.bf16.mxu1 %v4549_v26 }
 0x390   :  { %3352 = vmatpush1.bf16.msra.mxu1 %v4547_v27 }
 0x391   :  { %3353 = vmatprep.subr.bf16.mxu1 %v4555_v28 }
 0x394   :  { %3354 = vmatpush1.bf16.msra.mxu1 %v4553_v29 }
 0x395   :  { %3355 = vmatprep.subr.bf16.mxu1 %v4561_v30  ;;  %v4640_v30 = vld [vmem:[%s6287_s7 + $0x460] ss:$28 sps:$4 sm:$0xff]  }
 0x398   :  { %3356 = vmatpush1.bf16.msra.mxu1 %v4559_v31  ;;  %v4643_v31 = vld [vmem:[%s6287_s7 + $0x468] ss:$28 sps:$4 sm:$0xff]  }
 0x399   :  { %3357 = vmatprep.subr.bf16.mxu1 %v4567_v32  ;;  %v4648_v32 = vld [vmem:[%s6287_s7 + $0x49c] ss:$28 sps:$4 sm:$0xff]  }
 0x39c   :  { %3358 = vmatpush1.bf16.msra.mxu1 %v4565_v33  ;;  %v4651_v33 = vld [vmem:[%s6287_s7 + $0x4a4] ss:$28 sps:$4 sm:$0xff]  }
 0x39d   :  { %3359 = vmatprep.subr.bf16.mxu1 %v4573_v34  ;;  %v4646_v34 = vld [vmem:[%s6287_s7 + $0x498] ss:$28 sps:$4 sm:$0xff]  }
 0x3a0   :  { %3360 = vmatpush1.bf16.msra.mxu1 %v4571_v35  ;;  %v4649_v35 = vld [vmem:[%s6287_s7 + $0x4a0] ss:$28 sps:$4 sm:$0xff]  }
 0x3a1   :  { %3361 = vmatprep.subr.bf16.mxu1 %v4579_v36  ;;  %v4654_v36 = vld [vmem:[%s6287_s7 + $0x4d4] ss:$28 sps:$4 sm:$0xff]  }
 0x3a4   :  { %3362 = vmatpush1.bf16.msra.mxu1 %v4577_v37  ;;  %v4657_v37 = vld [vmem:[%s6287_s7 + $0x4dc] ss:$28 sps:$4 sm:$0xff]  }
 0x3a5   :  { %3363 = vmatprep.subr.bf16.mxu1 %v4585_v38  ;;  %v4652_v38 = vld [vmem:[%s6287_s7 + $0x4d0] ss:$28 sps:$4 sm:$0xff]  }
 0x3a8   :  { %3364 = vmatpush1.bf16.msra.mxu1 %v4583_v39  ;;  %v4655_v39 = vld [vmem:[%s6287_s7 + $0x4d8] ss:$28 sps:$4 sm:$0xff]  }
 0x3a9   :  { %3365 = vmatprep.subr.bf16.mxu1 %v4591_v40  ;;  %v4660_v40 = vld [vmem:[%s6287_s7 + $0x50c] ss:$28 sps:$4 sm:$0xff]  }
 0x3ac   :  { %3366 = vmatpush1.bf16.msra.mxu1 %v4589_v41  ;;  %v4663_v41 = vld [vmem:[%s6287_s7 + $0x514] ss:$28 sps:$4 sm:$0xff]  }
 0x3ad   :  { %3367 = vmatprep.subr.bf16.mxu1 %v4597_v45  ;;  %v4658_v45 = vld [vmem:[%s6287_s7 + $0x508] ss:$28 sps:$4 sm:$0xff]  }
 0x3b0   :  { %3368 = vmatpush1.bf16.msra.mxu1 %v4595_v48  ;;  %v4661_v48 = vld [vmem:[%s6287_s7 + $0x510] ss:$28 sps:$4 sm:$0xff]  }
 0x3b1   :  { %3369 = vmatprep.subr.bf16.mxu1 %v4603_v49  ;;  %v1939_v49 = vrot.slane %v5874_v59, %v5597_v44  ;;  %v4674_v59 = vld [vmem:[%s6287_s7 + $0x18] ss:$28 sps:$4 sm:$0xff]  }
 0x3b4   :  { %3370 = vmatpush1.bf16.msra.mxu1 %v4601_v50  ;;  %v4666_v50 = vld [vmem:[%s6287_s7 + $0x544] ss:$28 sps:$4 sm:$0xff]  }
 0x3b5   :  { %3371 = vmatprep.subr.bf16.mxu1 %v4609_v51  ;;  %v4669_v51 = vld [vmem:[%s6287_s7 + $0x54c] ss:$28 sps:$4 sm:$0xff]  }
 0x3b8   :  { %3372 = vmatpush1.bf16.msra.mxu1 %v4607_v52  ;;  %v4664_v52 = vld [vmem:[%s6287_s7 + $0x540] ss:$28 sps:$4 sm:$0xff]  }
 0x3b9   :  { %3373 = vmatprep.subr.bf16.mxu1 %v4615_v54 }
 0x3bc   :  { %3374 = vmatpush1.bf16.msra.mxu1 %v4613_v56  ;;  %v4673_v56 = vld [vmem:[%s6287_s7 + $0x1d8] ss:$28 sps:$4 sm:$0xff]  }
 0x3bd   :  { %3384 = vmatprep.subr.bf16.mxu1 %v4621_v58 }
 0x442   :  { %v2069_v62 = vpop.f32.mrb[8].mxu1 }
 0x443   :  { %v2070_v63 = vadd.f32 %v2069_v62, %v1931_v60  ;;  %v2071_v0 = vpop.f32.mrb[9].mxu1  ;;  %v4677_v60 = vld [vmem:[%s6287_s7 + $0x4c] ss:$28 sps:$4 sm:$0xff]  }
 0x444   :  { %v2072_v1 = vadd.f32 %v2071_v0, %v1935_v61  ;;  %v2073_v2 = vpop.f32.mrb[10].mxu1  ;;  %v4678_v61 = vld [vmem:[%s6287_s7 + $0x210] ss:$28 sps:$4 sm:$0xff]   ;;  %v4675_v62 = vld [vmem:[%s6287_s7 + $0x48] ss:$28 sps:$4 sm:$0xff]  }
 0x445   :  { %v2074_v3 = vpop.f32.mrb[11].mxu1  ;;  %v5888_v7 = vpack.c.bf16 %v2070_v63, %v2070_v63  ;;  %v4679_v63 = vld [vmem:[%s6287_s7 + $0x50] ss:$28 sps:$4 sm:$0xff]   ;;  %v4682_v0 = vld [vmem:[%s6287_s7 + $0x84] ss:$28 sps:$4 sm:$0xff]  }
 0x446   :  { %v5880_v4 = vpack.c.bf16 %v2072_v1, %v2072_v1  ;;  %v4683_v1 = vld [vmem:[%s6287_s7 + $0x248] ss:$28 sps:$4 sm:$0xff]   ;;  %v4680_v2 = vld [vmem:[%s6287_s7 + $0x80] ss:$28 sps:$4 sm:$0xff]  }
 0x447   :  { %v4684_v3 = vld [vmem:[%s6287_s7 + $0x88] ss:$28 sps:$4 sm:$0xff]  }
 0x448   :  { %3293 = vmatprep.mubr.bf16.mxu0 %v5880_v4  ;;  %3375 = vmatprep.mubr.bf16.mxu1 %v5880_v4 }
 0x449   :  { %3294 = vmatmul.mubr.bf16.vlgmr.msra.gmra.mrb[8].mxu0 %v5888_v7  ;;  %3376 = vmatmul.mubr.bf16.vlgmr.msra.gmra.mrb[16].mxu1 %v5888_v7 }
 0x44a   :  { %3303 = vmatpush1.bf16.msra.mxu0 %v4616_v5  ;;  %3385 = vmatpush1.bf16.msra.mxu1 %v4619_v6  ;;  %v4688_v5 = vld [vmem:[%s6287_s7 + $0x280] ss:$28 sps:$4 sm:$0xff]   ;;  %v4685_v6 = vld [vmem:[%s6287_s7 + $0xb8] ss:$28 sps:$4 sm:$0xff]  }
 0x44b   :  { %3304 = vmatprep.subr.bf16.mxu0 %v4624_v8  ;;  %3386 = vmatprep.subr.bf16.mxu1 %v4627_v9  ;;  %v4689_v8 = vld [vmem:[%s6287_s7 + $0xc0] ss:$28 sps:$4 sm:$0xff]   ;;  %v4692_v9 = vld [vmem:[%s6287_s7 + $0xf4] ss:$28 sps:$4 sm:$0xff]  }
 0x44e   :  { %3305 = vmatpush1.bf16.msra.mxu0 %v4622_v10  ;;  %3387 = vmatpush1.bf16.msra.mxu1 %v4625_v12  ;;  %v4693_v10 = vld [vmem:[%s6287_s7 + $0x2b8] ss:$28 sps:$4 sm:$0xff]   ;;  %v4690_v12 = vld [vmem:[%s6287_s7 + $0xf0] ss:$28 sps:$4 sm:$0xff]  }
 0x44f   :  { %3306 = vmatprep.subr.bf16.mxu0 %v4630_v13  ;;  %3388 = vmatprep.subr.bf16.mxu1 %v4633_v14  ;;  %v4694_v13 = vld [vmem:[%s6287_s7 + $0xf8] ss:$28 sps:$4 sm:$0xff]   ;;  %v4697_v14 = vld [vmem:[%s6287_s7 + $0x12c] ss:$28 sps:$4 sm:$0xff]  }
 0x452   :  { %v2110_v20 = vpop.f32.mrb[12].mxu1  ;;  %3307 = vmatpush1.bf16.msra.mxu0 %v4628_v11  ;;  %3389 = vmatpush1.bf16.msra.mxu1 %v4631_v16  ;;  %v4698_v11 = vld [vmem:[%s6287_s7 + $0x2f0] ss:$28 sps:$4 sm:$0xff]   ;;  %v4695_v16 = vld [vmem:[%s6287_s7 + $0x128] ss:$28 sps:$4 sm:$0xff]  }
 0x453   :  { %v2112_v23 = vpop.f32.mrb[13].mxu1  ;;  %3308 = vmatprep.subr.bf16.mxu0 %v4636_v17  ;;  %3390 = vmatprep.subr.bf16.mxu1 %v4639_v18  ;;  %v2111_v54 = vadd.f32 %v2110_v20, %v1939_v49  ;;  %v4699_v17 = vld [vmem:[%s6287_s7 + $0x130] ss:$28 sps:$4 sm:$0xff]   ;;  %v4702_v18 = vld [vmem:[%s6287_s7 + $0x164] ss:$28 sps:$4 sm:$0xff]  }
 0x454   :  { %v2113_v26 = vadd.f32 %v2112_v23, %v1943_v19  ;;  %v2114_v27 = vpop.f32.mrb[14].mxu1  ;;  %v4703_v19 = vld [vmem:[%s6287_s7 + $0x328] ss:$28 sps:$4 sm:$0xff]   ;;  %v4700_v20 = vld [vmem:[%s6287_s7 + $0x160] ss:$28 sps:$4 sm:$0xff]  }
 0x455   :  { %v2115_v28 = vpop.f32.mrb[15].mxu1  ;;  %v6009_v58 = vpack.c.bf16 %v2111_v54, %v2111_v54  ;;  %v4708_v23 = vld [vmem:[%s6287_s7 + $0x360] ss:$28 sps:$4 sm:$0xff]   ;;  %v4710_v27 = vld [vmem:[%s6287_s7 + $0x1d0] ss:$28 sps:$4 sm:$0xff]  }
 0x456   :  { %v5938_v29 = vpack.c.bf16 %v2113_v26, %v2113_v26  ;;  %3309 = vmatpush1.bf16.msra.mxu0 %v4634_v21  ;;  %3391 = vmatpush1.bf16.msra.mxu1 %v4637_v22  ;;  %v4704_v21 = vld [vmem:[%s6287_s7 + $0x168] ss:$28 sps:$4 sm:$0xff]   ;;  %v4707_v22 = vld [vmem:[%s6287_s7 + $0x19c] ss:$28 sps:$4 sm:$0xff]   ;;  %v4712_v26 = vld [vmem:[%s6287_s7 + $0x1d4] ss:$28 sps:$4 sm:$0xff]  }
 0x457   :  { %3310 = vmatprep.subr.bf16.mxu0 %v4642_v24  ;;  %3392 = vmatprep.subr.bf16.mxu1 %v4645_v25  ;;  %v4705_v24 = vld [vmem:[%s6287_s7 + $0x198] ss:$28 sps:$4 sm:$0xff]   ;;  %v4709_v25 = vld [vmem:[%s6287_s7 + $0x1a0] ss:$28 sps:$4 sm:$0xff]   ;;  %v4733_v49 = vld [vmem:[%s6287_s7 + $0x4b0] ss:$28 sps:$4 sm:$0xff]  }
 0x458   :  { %4073 = vmatprep.mubr.msk.bf16.mxu0 %vm1265_vm0, %v5938_v29  ;;  %4074 = vmatprep.mubr.msk.bf16.mxu1 %vm1265_vm0, %v5938_v29  ;;  %v4713_v28 = vld [vmem:[%s6287_s7 + $0x398] ss:$28 sps:$4 sm:$0xff]  }
 0x459   :  { %v4738_v54 = vld [vmem:[%s6287_s7 + $0x358] ss:$28 sps:$4 sm:$0xff]  }
 0x45a   :  { %3311 = vmatpush1.bf16.msra.mxu0 %v4640_v30  ;;  %3393 = vmatpush1.bf16.msra.mxu1 %v4643_v31  ;;  %v4716_v30 = vld [vmem:[%s6287_s7 + $0x20c] ss:$28 sps:$4 sm:$0xff]  }
 0x45b   :  { %3312 = vmatprep.subr.bf16.mxu0 %v4648_v32  ;;  %3394 = vmatprep.subr.bf16.mxu1 %v4651_v33  ;;  %v4714_v31 = vld [vmem:[%s6287_s7 + $0x208] ss:$28 sps:$4 sm:$0xff]   ;;  %v4717_v32 = vld [vmem:[%s6287_s7 + $0x3d0] ss:$28 sps:$4 sm:$0xff]  }
 0x45c   :  { %v4720_v33 = vld [vmem:[%s6287_s7 + $0x244] ss:$28 sps:$4 sm:$0xff]  }
 0x45e   :  { %3313 = vmatpush1.bf16.msra.mxu0 %v4646_v34  ;;  %3395 = vmatpush1.bf16.msra.mxu1 %v4649_v35  ;;  %v4718_v34 = vld [vmem:[%s6287_s7 + $0x240] ss:$28 sps:$4 sm:$0xff]   ;;  %v4721_v35 = vld [vmem:[%s6287_s7 + $0x408] ss:$28 sps:$4 sm:$0xff]  }
 0x45f   :  { %3314 = vmatprep.subr.bf16.mxu0 %v4654_v36  ;;  %3396 = vmatprep.subr.bf16.mxu1 %v4657_v37  ;;  %v4724_v36 = vld [vmem:[%s6287_s7 + $0x27c] ss:$28 sps:$4 sm:$0xff]  }
 0x460   :  { %v4722_v37 = vld [vmem:[%s6287_s7 + $0x278] ss:$28 sps:$4 sm:$0xff]  }
 0x462   :  { %3315 = vmatpush1.bf16.msra.mxu0 %v4652_v38  ;;  %3397 = vmatpush1.bf16.msra.mxu1 %v4655_v39  ;;  %v4725_v38 = vld [vmem:[%s6287_s7 + $0x440] ss:$28 sps:$4 sm:$0xff]   ;;  %v4728_v39 = vld [vmem:[%s6287_s7 + $0x2b4] ss:$28 sps:$4 sm:$0xff]  }
 0x463   :  { %3316 = vmatprep.subr.bf16.mxu0 %v4660_v40  ;;  %3398 = vmatprep.subr.bf16.mxu1 %v4663_v41  ;;  %v4726_v40 = vld [vmem:[%s6287_s7 + $0x2b0] ss:$28 sps:$4 sm:$0xff]   ;;  %v4729_v41 = vld [vmem:[%s6287_s7 + $0x478] ss:$28 sps:$4 sm:$0xff]  }
 0x466   :  { %3317 = vmatpush1.bf16.msra.mxu0 %v4658_v45  ;;  %3399 = vmatpush1.bf16.msra.mxu1 %v4661_v48  ;;  %v4732_v45 = vld [vmem:[%s6287_s7 + $0x2ec] ss:$28 sps:$4 sm:$0xff]  }
 0x467   :  { %3318 = vmatprep.subr.bf16.mxu0 %v4666_v50  ;;  %3400 = vmatprep.subr.bf16.mxu1 %v4669_v51  ;;  %v4730_v48 = vld [vmem:[%s6287_s7 + $0x2e8] ss:$28 sps:$4 sm:$0xff]   ;;  %v4734_v51 = vld [vmem:[%s6287_s7 + $0x320] ss:$28 sps:$4 sm:$0xff]  }
 0x468   :  { %v4736_v50 = vld [vmem:[%s6287_s7 + $0x324] ss:$28 sps:$4 sm:$0xff]  }
 0x46a   :  { %3319 = vmatpush1.bf16.msra.mxu0 %v4664_v52  ;;  %3401 = vmatpush1.bf16.msra.mxu1 %v4667_v53  ;;  %v4737_v52 = vld [vmem:[%s6287_s7 + $0x4e8] ss:$28 sps:$4 sm:$0xff]   ;;  %v4740_v53 = vld [vmem:[%s6287_s7 + $0x35c] ss:$28 sps:$4 sm:$0xff]  }
 0x46b   :  { %3425 = vmatprep.subr.bf16.mxu0 %v4672_v55  ;;  %4099 = vmatprep.subr.bf16.mxu1 %v4673_v56  ;;  %v4741_v55 = vld [vmem:[%s6287_s7 + $0x520] ss:$28 sps:$4 sm:$0xff]   ;;  %v4744_v56 = vld [vmem:[%s6287_s7 + $0x394] ss:$28 sps:$4 sm:$0xff]  }
 0x46d   :  { %3335 = vmatmul.mubr.bf16.vlgmr.msra.gmra.mrb[8].mxu0 %v6009_v58  ;;  %3417 = vmatmul.mubr.bf16.vlgmr.msra.gmra.mrb[16].mxu1 %v6009_v58 }
 0x46e   :  { %3426 = vmatpush1.bf16.msra.mxu0 %v4670_v57  ;;  %3457 = vmatprep.mubr.bf16.mxu0 %v5880_v4  ;;  %v4742_v57 = vld [vmem:[%s6287_s7 + $0x390] ss:$28 sps:$4 sm:$0xff]  }
 0x46f   :  { %4100 = vmatpush3.bf16.msra.mxu1 %v4674_v59  ;;  %3539 = vmatprep.mubr.bf16.mxu1 %v5880_v4  ;;  %v4687_v4 = vld [vmem:[%s6287_s7 + $0xbc] ss:$28 sps:$4 sm:$0xff]  }
 0x470   :  { %3427 = vmatprep.subr.bf16.mxu0 %v4677_v60  ;;  %4101 = vmatprep.subr.bf16.mxu1 %v4678_v61  ;;  %v4745_v59 = vld [vmem:[%s6287_s7 + $0x558] ss:$28 sps:$4 sm:$0xff]   ;;  %v4748_v60 = vld [vmem:[%s6287_s7 + $0x3cc] ss:$28 sps:$4 sm:$0xff]  }
 0x471   :  { %v4746_v61 = vld [vmem:[%s6287_s7 + $0x3c8] ss:$28 sps:$4 sm:$0xff]  }
 0x472   :  { %3428 = vmatpush1.bf16.msra.mxu0 %v4675_v62  ;;  %v4751_v62 = vld [vmem:[%s6287_s7 + $0x404] ss:$28 sps:$4 sm:$0xff]  }
 0x473   :  { %4102 = vmatpush3.bf16.msra.mxu1 %v4679_v63  ;;  %3429 = vmatprep.subr.bf16.mxu0 %v4682_v0  ;;  %v4757_v63 = vld [vmem:[%s6287_s7 + $0x474] ss:$28 sps:$4 sm:$0xff]  }
 0x474   :  { %4103 = vmatprep.subr.bf16.mxu1 %v4683_v1  ;;  %v4755_v0 = vld [vmem:[%s6287_s7 + $0x470] ss:$28 sps:$4 sm:$0xff]  }
 0x475   :  { %v4760_v1 = vld [vmem:[%s6287_s7 + $0x4ac] ss:$28 sps:$4 sm:$0xff]  }
 0x476   :  { %3430 = vmatpush1.bf16.msra.mxu0 %v4680_v2  ;;  %v4758_v2 = vld [vmem:[%s6287_s7 + $0x4a8] ss:$28 sps:$4 sm:$0xff]  }
 0x477   :  { %4104 = vmatpush3.bf16.msra.mxu1 %v4684_v3  ;;  %3431 = vmatprep.subr.bf16.mxu0 %v4687_v4  ;;  %v4763_v3 = vld [vmem:[%s6287_s7 + $0x4e4] ss:$28 sps:$4 sm:$0xff]  }
 0x478   :  { %4105 = vmatprep.subr.bf16.mxu1 %v4688_v5  ;;  %v4761_v4 = vld [vmem:[%s6287_s7 + $0x4e0] ss:$28 sps:$4 sm:$0xff]  }
 0x479   :  { %v4766_v5 = vld [vmem:[%s6287_s7 + $0x51c] ss:$28 sps:$4 sm:$0xff]  }
 0x47a   :  { %3432 = vmatpush1.bf16.msra.mxu0 %v4685_v6  ;;  %v4764_v6 = vld [vmem:[%s6287_s7 + $0x518] ss:$28 sps:$4 sm:$0xff]  }
 0x47b   :  { %4106 = vmatpush3.bf16.msra.mxu1 %v4689_v8  ;;  %3433 = vmatprep.subr.bf16.mxu0 %v4692_v9  ;;  %v4769_v8 = vld [vmem:[%s6287_s7 + $0x554] ss:$28 sps:$4 sm:$0xff]  }
 0x47c   :  { %4107 = vmatprep.subr.bf16.mxu1 %v4693_v10  ;;  %v4767_v9 = vld [vmem:[%s6287_s7 + $0x550] ss:$28 sps:$4 sm:$0xff]   ;;  %v6251_v10 = vld [vmem:[%s6288_s8] sm:$0x7f] }
 0x47e   :  { %3434 = vmatpush1.bf16.msra.mxu0 %v4690_v12  ;;  %v2326_v12 = vrot.slane %v6251_v10, %v5594_v43 }
 0x47f   :  { %4108 = vmatpush3.bf16.msra.mxu1 %v4694_v13  ;;  %3435 = vmatprep.subr.bf16.mxu0 %v4697_v14  ;;  %v2334_v13 = vrot.slane %v6251_v10, %v5597_v44  ;;  %v2330_v14 = vrot.slane %v6251_v10, %v5603_v46 }
 0x480   :  { %4109 = vmatprep.subr.bf16.mxu1 %v4698_v11  ;;  %v2338_v11 = vrot.slane %v6251_v10, %v5606_v47 }
 0x482   :  { %3436 = vmatpush1.bf16.msra.mxu0 %v4695_v16 }
 0x483   :  { %4110 = vmatpush3.bf16.msra.mxu1 %v4699_v17  ;;  %3437 = vmatprep.subr.bf16.mxu0 %v4702_v18 }
 0x484   :  { %4111 = vmatprep.subr.bf16.mxu1 %v4703_v19 }
 0x486   :  { %3438 = vmatpush1.bf16.msra.mxu0 %v4700_v20 }
 0x487   :  { %4112 = vmatpush3.bf16.msra.mxu1 %v4704_v21  ;;  %3439 = vmatprep.subr.bf16.mxu0 %v4707_v22 }
 0x488   :  { %4113 = vmatprep.subr.bf16.mxu1 %v4708_v23 }
 0x48a   :  { %3440 = vmatpush1.bf16.msra.mxu0 %v4705_v24 }
 0x48b   :  { %4114 = vmatpush3.bf16.msra.mxu1 %v4709_v25  ;;  %3441 = vmatprep.subr.bf16.mxu0 %v4712_v26 }
 0x48c   :  { %3547 = vmatprep.subr.bf16.mxu1 %v4824_v15 }
 0x48e   :  { %3540 = vmatmul.mubr.bf16.vlgmr.msra.gmra.mrb[20].mxu1 %v5888_v7  ;;  %3442 = vmatpush1.bf16.msra.mxu0 %v4710_v27 }
 0x48f   :  { %3548 = vmatpush1.bf16.msra.mxu1 %v4713_v28  ;;  %4076 = vmatprep.mubr.msk.bf16.mxu1 %vm1265_vm0, %v5938_v29 }
 0x490   :  { %3443 = vmatprep.subr.bf16.mxu0 %v4716_v30  ;;  %3549 = vmatprep.subr.bf16.mxu1 %v4824_v15 }
 0x492   :  { %3444 = vmatpush1.bf16.msra.mxu0 %v4714_v31 }
 0x493   :  { %3550 = vmatpush1.bf16.msra.mxu1 %v4717_v32  ;;  %3445 = vmatprep.subr.bf16.mxu0 %v4720_v33 }
 0x494   :  { %3551 = vmatprep.subr.bf16.mxu1 %v4824_v15 }
 0x496   :  { %3446 = vmatpush1.bf16.msra.mxu0 %v4718_v34 }
 0x497   :  { %3552 = vmatpush1.bf16.msra.mxu1 %v4721_v35  ;;  %3447 = vmatprep.subr.bf16.mxu0 %v4724_v36 }
 0x498   :  { %3553 = vmatprep.subr.bf16.mxu1 %v4824_v15 }
 0x49a   :  { %3448 = vmatpush1.bf16.msra.mxu0 %v4722_v37 }
 0x49b   :  { %3554 = vmatpush1.bf16.msra.mxu1 %v4725_v38  ;;  %3449 = vmatprep.subr.bf16.mxu0 %v4728_v39 }
 0x49c   :  { %3555 = vmatprep.subr.bf16.mxu1 %v4824_v15 }
 0x49e   :  { %3450 = vmatpush1.bf16.msra.mxu0 %v4726_v40 }
 0x49f   :  { %3556 = vmatpush1.bf16.msra.mxu1 %v4729_v41  ;;  %3451 = vmatprep.subr.bf16.mxu0 %v4732_v45 }
 0x4a0   :  { %3557 = vmatprep.subr.bf16.mxu1 %v4824_v15 }
 0x4a2   :  { %3452 = vmatpush1.bf16.msra.mxu0 %v4730_v48 }
 0x4a3   :  { %3558 = vmatpush1.bf16.msra.mxu1 %v4733_v49  ;;  %3453 = vmatprep.subr.bf16.mxu0 %v4736_v50 }
 0x4a4   :  { %3559 = vmatprep.subr.bf16.mxu1 %v4824_v15 }
 0x4a6   :  { %3454 = vmatpush1.bf16.msra.mxu0 %v4734_v51 }
 0x4a7   :  { %3560 = vmatpush1.bf16.msra.mxu1 %v4737_v52  ;;  %3455 = vmatprep.subr.bf16.mxu0 %v4740_v53 }
 0x4a8   :  { %3561 = vmatprep.subr.bf16.mxu1 %v4824_v15 }
 0x4aa   :  { %3456 = vmatpush1.bf16.msra.mxu0 %v4738_v54  ;;  %v2349_v54 = vsub.s32 6, %v5591_v42 }
 0x4ab   :  { %3562 = vmatpush1.bf16.msra.mxu1 %v4741_v55  ;;  %3466 = vmatprep.subr.bf16.mxu0 %v4744_v56 }
 0x4ac   :  { %3563 = vmatprep.subr.bf16.mxu1 %v4824_v15  ;;  %v4749_v15 = vld [vmem:[%s6287_s7 + $0x400] ss:$28 sps:$4 sm:$0xff]   ;;  %v2350_v55 = vrot.slane %v6251_v10, %v2349_v54 }
 0x4ad   :  { %3458 = vmatmul.mubr.bf16.vlgmr.msra.gmra.mrb[12].mxu0 %v5888_v7  ;;  %v4754_v7 = vld [vmem:[%s6287_s7 + $0x43c] ss:$28 sps:$4 sm:$0xff]  }
 0x4ae   :  { %3467 = vmatpush1.bf16.msra.mxu0 %v4742_v57  ;;  %4075 = vmatprep.mubr.msk.bf16.mxu0 %vm1265_vm0, %v5938_v29  ;;  %v4752_v29 = vld [vmem:[%s6287_s7 + $0x438] ss:$28 sps:$4 sm:$0xff]   ;;  %s4826_s7 = smov [#allocation2]  }
 0x4af   :  { %3564 = vmatpush1.bf16.msra.mxu1 %v4745_v59  ;;  %3468 = vmatprep.subr.bf16.mxu0 %v4748_v60  ;;  %s3636_s8 = sshll.u32 %s4826_s7, 4  ;;  %s3637_s8 = int_to_ptr.vmem [resolvable:$true] %s3636_s8 }
 0x4b0   :  { %s4800_s14 = scalar_lea.vmem %s3637_s8, 896  ;;  %p4805_p1 = scmp.lt.s32.totalorder %s3637_s8, %s3637_s8 }
 0x4b1   :  { %p4801_p0 = scmp.ne.s32.totalorder %s3637_s8, %s4800_s14  ;;  %p4806_p2 = scmp.lt.s32.totalorder %s4800_s14, %s4800_s14 }
 0x4b2   :  { %3580 = vmatmul.mubr.bf16.vlgmr.msra.gmra.mrb[24].mxu1 %v6009_v58  ;;  %3469 = vmatpush1.bf16.msra.mxu0 %v4746_v61 }
 0x4b3   :  { %3470 = vmatprep.subr.bf16.mxu0 %v4751_v62  ;;  %p4807_p3 = por %p4806_p2, %p4805_p1 }
 0x4b5   :  { %p4808_p4 = pnand %p4807_p3, %p4801_p0 }
 0x4b6   :  { %3471 = vmatpush1.bf16.msra.mxu0 %v4749_v15 }
 0x4b7   :  { %3472 = vmatprep.subr.bf16.mxu0 %v4754_v7 }
 0x4ba   :  { %3473 = vmatpush1.bf16.msra.mxu0 %v4752_v29 }
 0x4bb   :  { %3474 = vmatprep.subr.bf16.mxu0 %v4757_v63 }
 0x4be   :  { %3475 = vmatpush1.bf16.msra.mxu0 %v4755_v0  ;;  %v2341_v0 = vsub.s32 4, %v5591_v42 }
 0x4bf   :  { %3476 = vmatprep.subr.bf16.mxu0 %v4760_v1  ;;  %v2345_v1 = vsub.s32 5, %v5591_v42 }
 0x4c2   :  { %3477 = vmatpush1.bf16.msra.mxu0 %v4758_v2  ;;  %v2342_v2 = vrot.slane %v6251_v10, %v2341_v0 }
 0x4c3   :  { %3478 = vmatprep.subr.bf16.mxu0 %v4763_v3  ;;  %v2346_v3 = vrot.slane %v6251_v10, %v2345_v1 }
 0x4c6   :  { %3479 = vmatpush1.bf16.msra.mxu0 %v4761_v4 }
 0x4c7   :  { %3480 = vmatprep.subr.bf16.mxu0 %v4766_v5 }
 0x4ca   :  { %3481 = vmatpush1.bf16.msra.mxu0 %v4764_v6 }
 0x4cb   :  { %3482 = vmatprep.subr.bf16.mxu0 %v4769_v8 }
 0x4ce   :  { %3483 = vmatpush1.bf16.msra.mxu0 %v4767_v9 }
 0x4d1   :  { %3499 = vmatmul.mubr.bf16.vlgmr.msra.gmra.mrb[12].mxu0 %v6009_v58 }
 0x540   :  { %v3336_v16 = vpop.f32.mrb[8].mxu0  ;;  %v3418_v17 = vpop.f32.mrb[16].mxu1 }
 0x541   :  { %v4125_v58 = vadd.f32 %v3336_v16, %v2326_v12  ;;  %v4127_v18 = vadd.f32 %v3418_v17, %v2334_v13  ;;  %v3338_v19 = vpop.f32.mrb[9].mxu0  ;;  %v3420_v20 = vpop.f32.mrb[17].mxu1 }
 0x542   :  { %v4126_v21 = vadd.f32 %v3338_v19, %v2330_v14  ;;  %v4128_v22 = vadd.f32 %v3420_v20, %v2338_v11  ;;  %v3340_v23 = vpop.f32.mrb[10].mxu0  ;;  %v3422_v24 = vpop.f32.mrb[18].mxu1 }
 0x543   :  { %v3587_v43 = vsub.f32 0.0, %v4125_v58  ;;  %v3589_v25 = vsub.f32 0.0, %v4127_v18  ;;  %v3341_v26 = vpop.f32.mrb[11].mxu0  ;;  %v3423_v44 = vpop.f32.mrb[19].mxu1 }
 0x544   :  { %v3588_v27 = vsub.f32 0.0, %v4126_v21  ;;  %v3590_v28 = vsub.f32 0.0, %v4128_v22 }
 0x545   :  { %v3594_v46 = vmul.f32 1.442695, %v3587_v43  ;;  %v3598_v30 = vmul.f32 1.442695, %v3589_v25 }
 0x546   :  { %v3596_v31 = vmul.f32 1.442695, %v3588_v27  ;;  %v3600_v47 = vmul.f32 1.442695, %v3590_v28 }
 0x547   :  { %4772 = vpow2.f32 %v3594_v46 }
 0x548   :  { %4774 = vpow2.f32 %v3598_v30 }
 0x549   :  { %4776 = vpow2.f32 %v3596_v31 }
 0x54a   :  { %4778 = vpow2.f32 %v3600_v47 }
 0x551   :  { %v4773_v32 = vpop.eup %4772 }
 0x552   :  { %v4775_v33 = vpop.eup %4774  ;;  %v3608_v34 = vadd.f32 1.0, %v4773_v32 }
 0x553   :  { %v4777_v35 = vpop.eup %4776  ;;  %v3610_v36 = vadd.f32 1.0, %v4775_v33 }
 0x554   :  { %v4779_v37 = vpop.eup %4778  ;;  %4780 = vrcp.f32 %v3608_v34  ;;  %v3609_v38 = vadd.f32 1.0, %v4777_v35 }
 0x555   :  { %4782 = vrcp.f32 %v3610_v36  ;;  %v3611_v39 = vadd.f32 1.0, %v4779_v37 }
 0x556   :  { %4784 = vrcp.f32 %v3609_v38 }
 0x557   :  { %4786 = vrcp.f32 %v3611_v39 }
 0x55e   :  { %v4781_v40 = vpop.eup %4780 }
 0x55f   :  { %v4783_v41 = vpop.eup %4782  ;;  %3622 = vst [vmem:[#allocation2] sm:$0xff] %v4781_v40 }
 0x560   :  { %v4785_v45 = vpop.eup %4784  ;;  %3624 = vst [vmem:[#allocation2 + $0x10] sm:$0xff] %v4783_v41 }
 0x561   :  { %v4787_v48 = vpop.eup %4786  ;;  %3623 = vst [vmem:[#allocation2 + $0x8] sm:$0xff] %v4785_v45  ;;  %v4115_v49 = vpop.f32.mrb[20].mxu1 }
 0x562   :  { %3625 = vst [vmem:[#allocation2 + $0x18] sm:$0xff] %v4787_v48  ;;  %v4116_v50 = vpop.f32.mrb[21].mxu1 }
 0x563   :  { %v4117_v51 = vadd.f32 %v4116_v50, %v4115_v49  ;;  %v4118_v52 = vpop.f32.mrb[22].mxu1 }
 0x564   :  { %v4119_v53 = vpop.f32.mrb[23].mxu1 }
 0x565   :  { %v3542_v56 = vadd.f32 %v4117_v51, %v2350_v55 }
 0x585   :  { %v3581_v57 = vpop.f32.mrb[24].mxu1 }
 0x586   :  { %v3582_v59 = vadd.f32 %v3581_v57, %v3542_v56  ;;  %v3583_v60 = vpop.f32.mrb[25].mxu1 }
 0x587   :  { %v3584_v61 = vpop.f32.mrb[26].mxu1 }
 0x588   :  { %v3593_v62 = vsub.f32 0.0, %v3582_v59  ;;  %v3585_v15 = vpop.f32.mrb[27].mxu1 }
 0x58a   :  { %v3606_v7 = vmul.f32 1.442695, %v3593_v62 }
 0x58c   :  { %4788 = vpow2.f32 %v3606_v7 }
 0x596   :  { %v4789_v29 = vpop.eup %4788 }
 0x597   :  { %v3614_v63 = vadd.f32 1.0, %v4789_v29 }
 0x599   :  { %4790 = vrcp.f32 %v3614_v63 }
 0x5a3   :  { %v4791_v4 = vpop.eup %4790 }
 0x5a4   :  { %3628 = vst.msk [vmem:[#allocation2 + $0x30] sm:$0xff] %vm1265_vm0, %v4791_v4  ;;  %v3500_v5 = vpop.f32.mrb[12].mxu0 }
 0x5a5   :  { %v4129_v6 = vadd.f32 %v3500_v5, %v2342_v2  ;;  %v3502_v8 = vpop.f32.mrb[13].mxu0 }
 0x5a6   :  { %v4130_v9 = vadd.f32 %v3502_v8, %v2346_v3  ;;  %v3504_v12 = vpop.f32.mrb[14].mxu0 }
 0x5a7   :  { %v3591_v13 = vsub.f32 0.0, %v4129_v6  ;;  %v3505_v14 = vpop.f32.mrb[15].mxu0 }
 0x5a8   :  { %v3592_v11 = vsub.f32 0.0, %v4130_v9 }
 0x5a9   :  { %v3602_v16 = vmul.f32 1.442695, %v3591_v13 }
 0x5aa   :  { %v3604_v17 = vmul.f32 1.442695, %v3592_v11 }
 0x5ab   :  { %4792 = vpow2.f32 %v3602_v16 }
 0x5ac   :  { %4794 = vpow2.f32 %v3604_v17 }
 0x5b5   :  { %v4793_v42 = vpop.eup %4792 }
 0x5b6   :  { %v4795_v58 = vpop.eup %4794  ;;  %v3612_v18 = vadd.f32 1.0, %v4793_v42 }
 0x5b7   :  { %v3613_v19 = vadd.f32 1.0, %v4795_v58 }
 0x5b8   :  { %4796 = vrcp.f32 %v3612_v18 }
 0x5b9   :  { %4798 = vrcp.f32 %v3613_v19 }
 0x5c2   :  { %v4797_v10 = vpop.eup %4796 }
 0x5c3   :  { %v4799_v20 = vpop.eup %4798  ;;  %3626 = vst [vmem:[#allocation2 + $0x20] sm:$0xff] %v4797_v10 }
 0x5c4   :  { %3627 = vst [vmem:[#allocation2 + $0x28] sm:$0xff] %v4799_v20 }
 0x5c5   :  { %4811 = shalt.err (!%p4808_p4)
}
 0x5c6   :  { %s4812_s17 = scalar_lea.hbm %s6290_s10, 896 }
 0x5c7   :  { %p4813_p5 = scmp.ne.s32.totalorder %s6290_s10, %s4812_s17  ;;  %p4816_p6 = scmp.lt.u32.totalorder %s4812_s17, %s6290_s10 }
 0x5c9   :  { %p4818_p7 = pnand %p4816_p6, %p4813_p5 }
 0x5cb   :  { %4821 = shalt.err (!%p4818_p7)
}
 0x5cc   :  { %3639 = dma.vmem_to_hbm [thread:$0]  %s3637_s8, 896, %s6290_s10, [#allocation3]  }
 0x5cd   :  { %4822 = dma.done.wait [#allocation3], 896  }
 0x5ce   :  { %4823 = vsyncadd [#allocation3], 4294966400 }
 0x5cf   :  { %3647 = vsyncpa [#allocation3], 1 }

</bundles_post_ra>
